<compile_context>
chip_gen: v6e
topology: v6e:2x2x1
jax: 0.10.0
libtpu: 0.0.40
codegen_flags: <defaults>
</compile_context>

<pallas_src>
import functools

import jax
import jax.numpy as jnp
import numpy as np
from jax import lax
from jax.experimental import pallas as pl
from jax.experimental.pallas import tpu as pltpu

# rhs column order: sq1, sq2, ones, and_bce*conf, and_bce, conf, or_bce
_N_COLS = 7


def _overlap_loss_kernel(preds_ref, conf_ref, ov_ref, inst_ref, out_ref,
                         acc_ref, *, k_max, chunk_t, n_chunks):
    t = pl.program_id(1)
    n_t = pl.num_programs(1)
    k1 = k_max + 1

    @pl.when(t == 0)
    def _init():
        acc_ref[...] = jnp.zeros_like(acc_ref)

    # Key ids as bf16 (exact for k_max <= 255). Row k_max is the catch-all for
    # out-of-range labels, keeping the folded global sums exact.
    keys = lax.broadcasted_iota(jnp.int32, (1, k1, 1), 1).astype(jnp.bfloat16)

    def safe_log(x):                                 # BCELoss clamps log at -100
        return jnp.maximum(jnp.log(x), -100.0)

    @pl.loop(0, n_chunks)
    def _chunk(c):
        off = pl.multiple_of(c * chunk_t, chunk_t)
        sl = pl.ds(off, chunk_t)

        pr = preds_ref[:, :, :, sl].astype(jnp.float32)      # [B, 2, 8, ct]
        b = pr.shape[0]
        b8 = b * 8
        # Leading-dim merge only (layout preserving): [B, 8, ct] -> [B*8, ct].
        p1 = pr[:, 0].reshape(b8, chunk_t)
        p2 = pr[:, 1].reshape(b8, chunk_t)
        conf = conf_ref[:, sl].astype(jnp.float32)           # [B8, ct] (0/1)
        ov = ov_ref[:, sl].astype(jnp.float32)               # [B8, ct] (0/1)
        inst = inst_ref[:, sl].astype(jnp.int32)             # [B8, ct]

        # BCE with exactly-0/1 targets: one log per element.
        and_preds = p1 * p2
        and_bce = -safe_log(jnp.where(ov == 1.0, and_preds, 1.0 - and_preds))
        or_preds = jnp.maximum(p1, p2)
        or_bce = -safe_log(jnp.where(conf == 1.0, or_preds, 1.0 - or_preds))
        mask1 = (conf == 1.0).astype(jnp.float32)

        # Per-instance MSE terms: sum((op*m - m)^2) == sum(m * (op - 1)^2).
        and_overlap = and_preds * ov
        op1 = jnp.maximum(p1, and_overlap)
        op2 = jnp.maximum(p2, and_overlap)
        sq1 = (op1 - 1.0) * (op1 - 1.0)
        sq2 = (op2 - 1.0) * (op2 - 1.0)

        cols = (sq1, sq2, jnp.ones_like(sq1), and_bce * mask1, and_bce, mask1,
                or_bce)
        rhs = jnp.stack([x.astype(jnp.bfloat16) for x in cols],
                        axis=1)                               # [B8, 7, ct]

        # TODO(synk): out-of-range labels are folded into the catch-all row
        # (kept out of the instance loss), unlike torch.unique.
        in_range = (inst >= 0) & (inst < k_max)
        inst_eff = jnp.where(in_range, inst, k_max).astype(jnp.bfloat16)
        masks = (inst_eff[:, None, :] == keys).astype(jnp.bfloat16)  # [B8,K1,ct]

        # One single-pass bf16 MXU matmul carries every reduction in the kernel.
        acc_ref[...] += jnp.einsum('bkt,bct->bkc', masks, rhs,
                                   preferred_element_type=jnp.float32)

    @pl.when(t == n_t - 1)
    def _flush():
        out_ref[0] = acc_ref[...]


def _largest_multiple_divisor(total, quantum, cap):
    """Largest multiple of `quantum` that divides `total` and is <= cap."""
    if total % quantum:
        return None
    n = total // quantum
    d = max(1, min(n, max(cap // quantum, 1)))
    while d >= 1:
        if n % d == 0:
            return d * quantum
        d -= 1
    return None


@functools.partial(jax.jit,
                   static_argnames=("k_max", "tile_t", "chunk_t", "n_super"))
def overlap_loss_pallas(preds, conf, inst, overlap, inds=None, *, k_max=8,
                        tile_t=None, chunk_t=None, n_super=None):
    # `inds` is unused by the original torch forward as well.
    del inds
    B, two, H, W = preds.shape
    assert two == 2
    HW = H * W
    # TODO(synk): pad the spatial axis instead of asserting when HW % 8 != 0.
    assert HW % 8 == 0, "H*W must be divisible by 8"
    t_full = HW // 8
    b8 = B * 8
    k1 = k_max + 1

    # --- static tiling decisions (shapes are static under jit) --------------
    bytes_per_lane = (b8 * 2 * preds.dtype.itemsize
                      + b8 * conf.dtype.itemsize
                      + b8 * overlap.dtype.itemsize
                      + b8 * inst.dtype.itemsize)
    if tile_t is None:
        cap = max(128, (6 * 1024 * 1024) // bytes_per_lane)   # ~6 MiB / tile
        tile_t = _largest_multiple_divisor(t_full, 128, cap) or t_full
    assert t_full % tile_t == 0, "tile_t must divide H*W/8"
    if chunk_t is None:
        if tile_t % 128 == 0:
            cap = max(128, (max(2048 // b8, 128) // 128) * 128)  # ~2048 px/chunk
            chunk_t = _largest_multiple_divisor(tile_t, 128, cap) or tile_t
        else:
            chunk_t = tile_t
    assert tile_t % chunk_t == 0, "chunk_t must divide tile_t"
    n_chunks = tile_t // chunk_t
    n_total = t_full // tile_t
    if n_super is None:
        n_super = 2 if (n_total % 2 == 0 and n_total >= 2) else 1
    assert n_total % n_super == 0, "n_super must divide the number of tiles"
    n_steps = n_total // n_super

    # Free (bit-identical) reshapes only; channel split & dtype widening happen
    # in-kernel, so narrow HBM dtypes (bf16 preds, int8 labels) are supported
    # for bandwidth-bound v5e without extra XLA HBM->HBM passes.
    preds4 = preds.reshape(B, 2, 8, t_full)
    conf2 = conf.reshape(b8, t_full)
    ov2 = overlap.reshape(b8, t_full)
    inst2 = inst.reshape(b8, t_full)

    kernel = functools.partial(_overlap_loss_kernel, k_max=k_max,
                               chunk_t=chunk_t, n_chunks=n_chunks)
    lane_idx = lambda s, t: s * n_steps + t
    grid_spec = pltpu.PrefetchScalarGridSpec(
        num_scalar_prefetch=0,
        grid=(n_super, n_steps),
        in_specs=[
            pl.BlockSpec((B, 2, 8, tile_t),
                         lambda s, t: (0, 0, 0, lane_idx(s, t))),
            pl.BlockSpec((b8, tile_t), lambda s, t: (0, lane_idx(s, t))),
            pl.BlockSpec((b8, tile_t), lambda s, t: (0, lane_idx(s, t))),
            pl.BlockSpec((b8, tile_t), lambda s, t: (0, lane_idx(s, t))),
        ],
        out_specs=pl.BlockSpec((1, b8, k1, _N_COLS),
                               lambda s, t: (s, 0, 0, 0)),
        scratch_shapes=[pltpu.VMEM((b8, k1, _N_COLS), jnp.float32)],
    )
    parts = pl.pallas_call(
        kernel,
        out_shape=jax.ShapeDtypeStruct((n_super, b8, k1, _N_COLS), jnp.float32),
        grid_spec=grid_spec,
        compiler_params=pltpu.CompilerParams(
            dimension_semantics=("parallel", "arbitrary"),
            vmem_limit_bytes=32 * 1024 * 1024,
        ),
    )(preds4, conf2, ov2, inst2)

    # --- tiny O(B*K) finalize in exact f32 (wrapper side) -------------------
    acc = parts.reshape(n_super, B, 8, k1, _N_COLS).sum(axis=(0, 2))  # [B,K1,7]
    g = acc.sum(axis=(0, 1))                                          # [7]
    total = float(B * HW)
    sum1, sum_all, cnt1, or_sum = g[3], g[4], g[5], g[6]
    cnt0 = total - cnt1
    # NaN/inf if conf is all-one / all-zero -- matches torch's mean-of-empty.
    and_loss = sum1 / cnt1 + (sum_all - sum1) / cnt0
    or_loss = or_sum / total

    s1 = acc[:, :k_max, 0]
    s2 = acc[:, :k_max, 1]
    cnt = acc[:, :k_max, 2]
    present = cnt > 0.5                    # counts are exact integers in f32
    safe_cnt = jnp.where(present, cnt, 1.0)
    d1 = s1 / safe_cnt
    d2 = s2 / safe_cnt
    # min(d1,d2) - max(d1,d2) + 1 == 1 - |d1 - d2|
    contrib = jnp.where(present, 1.0 - jnp.abs(d1 - d2), 0.0)         # [B, K]
    nkeys = jnp.maximum(jnp.sum(present.astype(jnp.float32), axis=1), 1.0)
    inst_loss = jnp.sum(jnp.sum(contrib, axis=1) / nkeys) / B

    return 0.5 * and_loss + 0.25 * or_loss + 0.25 * inst_loss


def _reference_loss(preds, conf, inst, overlap):
    """Pure numpy reference matching the PyTorch module."""
    preds = np.asarray(preds, np.float64)
    conf = np.asarray(conf, np.float64)
    inst = np.asarray(inst, np.int64)
    overlap = np.asarray(overlap, np.float64)

    def bce(x, y):
        return -(y * np.clip(np.log(x), -100.0, None) +
                 (1.0 - y) * np.clip(np.log(1.0 - x), -100.0, None))

    p1, p2 = preds[:, 0], preds[:, 1]
    and_preds = p1 * p2
    and_l = bce(and_preds, overlap)
    or_l = bce(np.maximum(p1, p2), conf)
    and_overlap = and_preds * overlap
    op1 = np.maximum(p1, and_overlap)
    op2 = np.maximum(p2, and_overlap)

    b = p1.shape[0]
    inst_loss = 0.0
    for i in range(b):
        keys = np.unique(inst[i])
        tmp = 0.0
        for k in keys:
            m = (inst[i] == k).astype(np.float64)
            s = m.sum()
            d1 = ((op1[i] * m - m) ** 2).sum() / s
            d2 = ((op2[i] * m - m) ** 2).sum() / s
            tmp += min(d1, d2) - max(d1, d2) + 1.0
        inst_loss += tmp / len(keys)
    inst_loss /= b

    and_loss = and_l[conf == 1].mean() + and_l[conf == 0].mean()
    or_loss = or_l.mean()
    return 0.5 * and_loss + 0.25 * or_loss + 0.25 * inst_loss


if __name__ == "__main__":
    B, H, W = 2, 64, 128
    K_MAX = 8
    key = jax.random.PRNGKey(0)
    k_preds, k_conf, k_ov, k_inst = jax.random.split(key, 4)

    preds = jax.nn.sigmoid(jax.random.normal(k_preds, (B, 2, H, W),
                                             dtype=jnp.float32))
    # conf/overlap are 0/1 masks: ship them narrow (bf16), widened in-kernel.
    conf = jax.random.bernoulli(k_conf, 0.5, (B, H, W)).astype(jnp.bfloat16)
    overlap = jax.random.bernoulli(k_ov, 0.3, (B, H, W)).astype(jnp.bfloat16)
    inst = jax.random.randint(k_inst, (B, H, W), 0, K_MAX, dtype=jnp.int32)
    inds = jnp.zeros((B,), jnp.int32)  # unused, as in the torch forward

    # tile_t=256 / chunk_t=128 -> grid (2 parallel supers x 2 steps) with a
    # 2-iteration inner chunk loop: exercises every code path at small size.
    loss = overlap_loss_pallas(preds, conf, inst, overlap, inds,
                               k_max=K_MAX, tile_t=256, chunk_t=128)
    loss = jax.block_until_ready(loss)

    ref = _reference_loss(np.asarray(preds),
                          np.asarray(conf.astype(jnp.float32)),
                          np.asarray(inst),
                          np.asarray(overlap.astype(jnp.float32)))
    assert np.isfinite(float(loss))
    # bf16 MXU operands round at ~2^-9 relative; 2e-3 leaves headroom.
    np.testing.assert_allclose(float(loss), float(ref), rtol=2e-3, atol=2e-3)
    print("KERNEL_OK")
</pallas_src>

<mosaic_0001>
module attributes {stable_mosaic.version = 11 : i64} {
  func.func @_overlap_loss_kernel(%arg0: i32, %arg1: i32, %arg2: memref<2x2x8x256xf32, #tpu.memory_space<vmem>>, %arg3: memref<16x256xbf16, #tpu.memory_space<vmem>>, %arg4: memref<16x256xbf16, #tpu.memory_space<vmem>>, %arg5: memref<16x256xi32, #tpu.memory_space<vmem>>, %arg6: memref<1x16x9x7xf32, #tpu.memory_space<vmem>>, %arg7: memref<16x9x7xf32, #tpu.memory_space<vmem>>) attributes {dimension_semantics = [#tpu.dimension_semantics<parallel>, #tpu.dimension_semantics<arbitrary>], iteration_bounds = array<i64: 2, 2>, scalar_prefetch = 0 : i64, scratch_operands = 1 : i64, tpu.core_type = #tpu.core_type<tc>, window_params = [{transform_indices = @transform_0, window_bounds = array<i64: 2, 2, 8, 256>}, {transform_indices = @transform_1, window_bounds = array<i64: 16, 256>}, {transform_indices = @transform_2, window_bounds = array<i64: 16, 256>}, {transform_indices = @transform_3, window_bounds = array<i64: 16, 256>}, {transform_indices = @transform_4, window_bounds = array<i64: 1, 16, 9, 7>}]} {
    %c0_i32 = arith.constant 0 : i32
    %0 = arith.cmpi eq, %arg1, %c0_i32 : i32
    %1 = arith.extui %0 : i1 to i32
    %c0_i32_0 = arith.constant 0 : i32
    %2 = arith.cmpi ne, %1, %c0_i32_0 : i32
    scf.if %2 {
      %cst = arith.constant 0.000000e+00 : f32
      %9 = vector.broadcast %cst : f32 to vector<16x9x7xf32>
      %c0 = arith.constant 0 : index
      %c0_5 = arith.constant 0 : index
      %c0_6 = arith.constant 0 : index
      %10 = vector.load %arg7[%c0, %c0_5, %c0_6] : memref<16x9x7xf32, #tpu.memory_space<vmem>>, vector<16x9x7xf32>
      tpu.vector_store %arg7[%c0, %c0_5, %c0_6], %9 {strides = array<i32>} : memref<16x9x7xf32, #tpu.memory_space<vmem>>, vector<16x9x7xf32>,
    } else {
    }
    %3 = tpu.iota {dimensions = array<i32: 1>} : vector<1x9x1xi32>
    %4 = arith.sitofp %3 : vector<1x9x1xi32> to vector<1x9x1xbf16>
    %c0_i32_1 = arith.constant 0 : i32
    %c2_i32 = arith.constant 2 : i32
    %5 = arith.addi %c0_i32_1, %c2_i32 : i32
    %c1_i32 = arith.constant 1 : i32
    scf.for %arg8 = %c0_i32_1 to %5 step %c1_i32  : i32 {
      %c1_i32_5 = arith.constant 1 : i32
      %9 = arith.muli %arg8, %c1_i32_5 : i32
      %c0_i32_6 = arith.constant 0 : i32
      %10 = arith.addi %c0_i32_6, %9 : i32
      %c128_i32 = arith.constant 128 : i32
      %11 = arith.muli %10, %c128_i32 : i32
      %12 = tpu.assume_multiple %11, 128 : i32
      %c0 = arith.constant 0 : index
      %c0_7 = arith.constant 0 : index
      %c0_8 = arith.constant 0 : index
      %13 = arith.index_cast %12 : i32 to index
      %14 = vector.load %arg2[%c0, %c0_7, %c0_8, %13] : memref<2x2x8x256xf32, #tpu.memory_space<vmem>>, vector<2x2x8x128xf32>
      %15 = vector.extract_strided_slice %14 {offsets = [0, 0, 0, 0], sizes = [2, 1, 8, 128], strides = [1, 1, 1, 1]} : vector<2x2x8x128xf32> to vector<2x1x8x128xf32>
      %16 = vector.shape_cast %15 : vector<2x1x8x128xf32> to vector<2x8x128xf32>
      %17 = vector.shape_cast %16 : vector<2x8x128xf32> to vector<16x128xf32>
      %18 = vector.extract_strided_slice %14 {offsets = [0, 1, 0, 0], sizes = [2, 1, 8, 128], strides = [1, 1, 1, 1]} : vector<2x2x8x128xf32> to vector<2x1x8x128xf32>
      %19 = vector.shape_cast %18 : vector<2x1x8x128xf32> to vector<2x8x128xf32>
      %20 = vector.shape_cast %19 : vector<2x8x128xf32> to vector<16x128xf32>
      %c0_9 = arith.constant 0 : index
      %21 = arith.index_cast %12 : i32 to index
      %22 = vector.load %arg3[%c0_9, %21] : memref<16x256xbf16, #tpu.memory_space<vmem>>, vector<16x128xbf16>
      %23 = arith.extf %22 : vector<16x128xbf16> to vector<16x128xf32>
      %c0_10 = arith.constant 0 : index
      %24 = arith.index_cast %12 : i32 to index
      %25 = vector.load %arg4[%c0_10, %24] : memref<16x256xbf16, #tpu.memory_space<vmem>>, vector<16x128xbf16>
      %26 = arith.extf %25 : vector<16x128xbf16> to vector<16x128xf32>
      %c0_11 = arith.constant 0 : index
      %27 = arith.index_cast %12 : i32 to index
      %28 = vector.load %arg5[%c0_11, %27] : memref<16x256xi32, #tpu.memory_space<vmem>>, vector<16x128xi32>
      %29 = arith.mulf %17, %20 : vector<16x128xf32>
      %cst = arith.constant 1.000000e+00 : f32
      %30 = vector.broadcast %cst : f32 to vector<16x128xf32>
      %31 = arith.cmpf oeq, %26, %30 : vector<16x128xf32>
      %cst_12 = arith.constant 1.000000e+00 : f32
      %32 = vector.broadcast %cst_12 : f32 to vector<16x128xf32>
      %33 = arith.subf %32, %29 : vector<16x128xf32>
      %34 = arith.select %31, %29, %33 : vector<16x128xi1>, vector<16x128xf32>
      %35 = math.log %34 : vector<16x128xf32>
      %cst_13 = arith.constant -1.000000e+02 : f32
      %36 = vector.broadcast %cst_13 : f32 to vector<16x128xf32>
      %37 = arith.maximumf %35, %36 : vector<16x128xf32>
      %cst_14 = arith.constant 0.000000e+00 : f32
      %38 = vector.broadcast %cst_14 : f32 to vector<16x128xf32>
      %39 = arith.subf %38, %37 : vector<16x128xf32>
      %40 = arith.maximumf %17, %20 : vector<16x128xf32>
      %cst_15 = arith.constant 1.000000e+00 : f32
      %41 = vector.broadcast %cst_15 : f32 to vector<16x128xf32>
      %42 = arith.cmpf oeq, %23, %41 : vector<16x128xf32>
      %cst_16 = arith.constant 1.000000e+00 : f32
      %43 = vector.broadcast %cst_16 : f32 to vector<16x128xf32>
      %44 = arith.subf %43, %40 : vector<16x128xf32>
      %45 = arith.select %42, %40, %44 : vector<16x128xi1>, vector<16x128xf32>
      %46 = math.log %45 : vector<16x128xf32>
      %cst_17 = arith.constant -1.000000e+02 : f32
      %47 = vector.broadcast %cst_17 : f32 to vector<16x128xf32>
      %48 = arith.maximumf %46, %47 : vector<16x128xf32>
      %cst_18 = arith.constant 0.000000e+00 : f32
      %49 = vector.broadcast %cst_18 : f32 to vector<16x128xf32>
      %50 = arith.subf %49, %48 : vector<16x128xf32>
      %cst_19 = arith.constant 1.000000e+00 : f32
      %51 = vector.broadcast %cst_19 : f32 to vector<16x128xf32>
      %52 = arith.cmpf oeq, %23, %51 : vector<16x128xf32>
      %53 = arith.extui %52 : vector<16x128xi1> to vector<16x128xi32>
      %54 = arith.sitofp %53 : vector<16x128xi32> to vector<16x128xf32>
      %55 = arith.mulf %29, %26 : vector<16x128xf32>
      %56 = arith.maximumf %17, %55 : vector<16x128xf32>
      %57 = arith.maximumf %20, %55 : vector<16x128xf32>
      %cst_20 = arith.constant 1.000000e+00 : f32
      %58 = vector.broadcast %cst_20 : f32 to vector<16x128xf32>
      %59 = arith.subf %56, %58 : vector<16x128xf32>
      %cst_21 = arith.constant 1.000000e+00 : f32
      %60 = vector.broadcast %cst_21 : f32 to vector<16x128xf32>
      %61 = arith.subf %56, %60 : vector<16x128xf32>
      %62 = arith.mulf %59, %61 : vector<16x128xf32>
      %cst_22 = arith.constant 1.000000e+00 : f32
      %63 = vector.broadcast %cst_22 : f32 to vector<16x128xf32>
      %64 = arith.subf %57, %63 : vector<16x128xf32>
      %cst_23 = arith.constant 1.000000e+00 : f32
      %65 = vector.broadcast %cst_23 : f32 to vector<16x128xf32>
      %66 = arith.subf %57, %65 : vector<16x128xf32>
      %67 = arith.mulf %64, %66 : vector<16x128xf32>
      %cst_24 = arith.constant 1.000000e+00 : f32
      %68 = vector.broadcast %cst_24 : f32 to vector<16x128xf32>
      %69 = arith.mulf %39, %54 : vector<16x128xf32>
      %70 = arith.truncf %62 : vector<16x128xf32> to vector<16x128xbf16>
      %71 = arith.truncf %67 : vector<16x128xf32> to vector<16x128xbf16>
      %72 = arith.truncf %68 : vector<16x128xf32> to vector<16x128xbf16>
      %73 = arith.truncf %69 : vector<16x128xf32> to vector<16x128xbf16>
      %74 = arith.truncf %39 : vector<16x128xf32> to vector<16x128xbf16>
      %75 = arith.truncf %54 : vector<16x128xf32> to vector<16x128xbf16>
      %76 = arith.truncf %50 : vector<16x128xf32> to vector<16x128xbf16>
      %77 = vector.shape_cast %70 : vector<16x128xbf16> to vector<16x1x128xbf16>
      %78 = vector.shape_cast %71 : vector<16x128xbf16> to vector<16x1x128xbf16>
      %79 = vector.shape_cast %72 : vector<16x128xbf16> to vector<16x1x128xbf16>
      %80 = vector.shape_cast %73 : vector<16x128xbf16> to vector<16x1x128xbf16>
      %81 = vector.shape_cast %74 : vector<16x128xbf16> to vector<16x1x128xbf16>
      %82 = vector.shape_cast %75 : vector<16x128xbf16> to vector<16x1x128xbf16>
      %83 = vector.shape_cast %76 : vector<16x128xbf16> to vector<16x1x128xbf16>
      %84 = tpu.concatenate %77, %78, %79, %80, %81, %82, %83 in 1 : vector<16x1x128xbf16>, vector<16x1x128xbf16>, vector<16x1x128xbf16>, vector<16x1x128xbf16>, vector<16x1x128xbf16>, vector<16x1x128xbf16>, vector<16x1x128xbf16> -> vector<16x7x128xbf16>
      %c0_i32_25 = arith.constant 0 : i32
      %85 = vector.broadcast %c0_i32_25 : i32 to vector<16x128xi32>
      %86 = arith.cmpi sge, %28, %85 : vector<16x128xi32>
      %c8_i32 = arith.constant 8 : i32
      %87 = vector.broadcast %c8_i32 : i32 to vector<16x128xi32>
      %88 = arith.cmpi slt, %28, %87 : vector<16x128xi32>
      %89 = arith.andi %86, %88 : vector<16x128xi1>
      %c8_i32_26 = arith.constant 8 : i32
      %90 = vector.broadcast %c8_i32_26 : i32 to vector<16x128xi32>
      %91 = arith.select %89, %28, %90 : vector<16x128xi1>, vector<16x128xi32>
      %92 = arith.sitofp %91 : vector<16x128xi32> to vector<16x128xbf16>
      %93 = vector.shape_cast %92 : vector<16x128xbf16> to vector<16x1x128xbf16>
      %94 = vector.broadcast %93 : vector<16x1x128xbf16> to vector<16x9x128xbf16>
      %95 = vector.broadcast %4 : vector<1x9x1xbf16> to vector<16x9x128xbf16>
      %96 = arith.cmpf oeq, %94, %95 : vector<16x9x128xbf16>
      %97 = arith.extui %96 : vector<16x9x128xi1> to vector<16x9x128xi32>
      %98 = arith.sitofp %97 : vector<16x9x128xi32> to vector<16x9x128xf32>
      %99 = arith.truncf %98 : vector<16x9x128xf32> to vector<16x9x128xbf16>
      %c0_27 = arith.constant 0 : index
      %c0_28 = arith.constant 0 : index
      %c0_29 = arith.constant 0 : index
      %100 = vector.load %arg7[%c0_27, %c0_28, %c0_29] : memref<16x9x7xf32, #tpu.memory_space<vmem>>, vector<16x9x7xf32>
      "tpu.trace_start"() <{level = 10 : i32, message = "bkt,bct->bkc"}> : () -> ()
      %cst_30 = arith.constant dense<0.000000e+00> : vector<16x9x7xf32>
      %101 = tpu.matmul %99, %84, %cst_30 {dimension_numbers = #tpu.dot_dimension_numbers<[2], [2], [1], [1], [0, 0, 0, 1, 1, 1], [0], [0]>} : vector<16x9x128xbf16>, vector<16x7x128xbf16>, vector<16x9x7xf32> -> vector<16x9x7xf32>
      "tpu.trace_stop"() : () -> ()
      %102 = arith.addf %100, %101 : vector<16x9x7xf32>
      %c0_31 = arith.constant 0 : index
      %c0_32 = arith.constant 0 : index
      %c0_33 = arith.constant 0 : index
      %103 = vector.load %arg7[%c0_31, %c0_32, %c0_33] : memref<16x9x7xf32, #tpu.memory_space<vmem>>, vector<16x9x7xf32>
      tpu.vector_store %arg7[%c0_31, %c0_32, %c0_33], %102 {strides = array<i32>} : memref<16x9x7xf32, #tpu.memory_space<vmem>>, vector<16x9x7xf32>,
    }
    %c2_i32_2 = arith.constant 2 : i32
    %c1_i32_3 = arith.constant 1 : i32
    %6 = arith.cmpi eq, %arg1, %c1_i32_3 : i32
    %7 = arith.extui %6 : i1 to i32
    %c0_i32_4 = arith.constant 0 : i32
    %8 = arith.cmpi ne, %7, %c0_i32_4 : i32
    scf.if %8 {
      %c0 = arith.constant 0 : index
      %c0_5 = arith.constant 0 : index
      %c0_6 = arith.constant 0 : index
      %9 = vector.load %arg7[%c0, %c0_5, %c0_6] : memref<16x9x7xf32, #tpu.memory_space<vmem>>, vector<16x9x7xf32>
      %c0_7 = arith.constant 0 : index
      %c0_8 = arith.constant 0 : index
      %c0_9 = arith.constant 0 : index
      %c0_10 = arith.constant 0 : index
      %10 = vector.load %arg6[%c0_7, %c0_8, %c0_9, %c0_10] : memref<1x16x9x7xf32, #tpu.memory_space<vmem>>, vector<1x16x9x7xf32>
      %11 = vector.shape_cast %10 : vector<1x16x9x7xf32> to vector<16x9x7xf32>
      %12 = vector.shape_cast %9 : vector<16x9x7xf32> to vector<1x16x9x7xf32>
      tpu.vector_store %arg6[%c0_7, %c0_8, %c0_9, %c0_10], %12 {strides = array<i32>} : memref<1x16x9x7xf32, #tpu.memory_space<vmem>>, vector<1x16x9x7xf32>,
    } else {
    }
    return
  }
  func.func @transform_0(%arg0: i32, %arg1: i32) -> (i32, i32, i32, i32) {
    %c2_i32 = arith.constant 2 : i32
    %0 = arith.muli %arg0, %c2_i32 : i32
    %1 = arith.addi %0, %arg1 : i32
    %c0_i32 = arith.constant 0 : i32
    %c0_i32_0 = arith.constant 0 : i32
    %c0_i32_1 = arith.constant 0 : i32
    %c0_i32_2 = arith.constant 0 : i32
    return %c0_i32, %c0_i32_0, %c0_i32_1, %1 : i32, i32, i32, i32
  }
  func.func @transform_1(%arg0: i32, %arg1: i32) -> (i32, i32) {
    %c2_i32 = arith.constant 2 : i32
    %0 = arith.muli %arg0, %c2_i32 : i32
    %1 = arith.addi %0, %arg1 : i32
    %c0_i32 = arith.constant 0 : i32
    %c0_i32_0 = arith.constant 0 : i32
    return %c0_i32, %1 : i32, i32
  }
  func.func @transform_2(%arg0: i32, %arg1: i32) -> (i32, i32) {
    %c2_i32 = arith.constant 2 : i32
    %0 = arith.muli %arg0, %c2_i32 : i32
    %1 = arith.addi %0, %arg1 : i32
    %c0_i32 = arith.constant 0 : i32
    %c0_i32_0 = arith.constant 0 : i32
    return %c0_i32, %1 : i32, i32
  }
  func.func @transform_3(%arg0: i32, %arg1: i32) -> (i32, i32) {
    %c2_i32 = arith.constant 2 : i32
    %0 = arith.muli %arg0, %c2_i32 : i32
    %1 = arith.addi %0, %arg1 : i32
    %c0_i32 = arith.constant 0 : i32
    %c0_i32_0 = arith.constant 0 : i32
    return %c0_i32, %1 : i32, i32
  }
  func.func @transform_4(%arg0: i32, %arg1: i32) -> (i32, i32, i32, i32) {
    %c0_i32 = arith.constant 0 : i32
    %c0_i32_0 = arith.constant 0 : i32
    %c0_i32_1 = arith.constant 0 : i32
    %c0_i32_2 = arith.constant 0 : i32
    return %arg0, %c0_i32, %c0_i32_0, %c0_i32_1 : i32, i32, i32, i32
  }
}

</mosaic_0001>

<bundles_post_ra>
// kernel: overlap_loss_pallas.1
= control target key start
LH: loop header
LB: loop body
LE: loop exit
PB: predicated region body
PF: predicated region fallthrough
CT: control target
= control target key end

     0   :  { %s3819_s15 = smov 0   ;;  %s3821_s16 = smov 0   ;;  %s4933_s0 = inlined_call_operand.vmem [shape: f32[2,2,8,1024], index: 0, kind: input, shape index: {}]   ;;  %s4934_s1 = inlined_call_operand.vmem [shape: bf16[16,1024], index: 1, kind: input, shape index: {}]   ;;  %s4935_s2 = inlined_call_operand.vmem [shape: bf16[16,1024], index: 2, kind: input, shape index: {}]   ;;  %s4936_s3 = inlined_call_operand.vmem [shape: s32[16,1024], index: 3, kind: input, shape index: {}]   ;;  %s4937_s4 = inlined_call_operand.vmem [shape: f32[2,16,9,7], index: 4, kind: output, shape index: {}]  }
   0x1   :  { %s3823_s17 = smov 0   ;;  %s3825_s18 = smov 0  }
   0x2   :  { %s3827_s19 = smov 0   ;;  %s3829_s20 = smov 0  }
   0x3   :  { %s3831_s21 = smov 0  }
   0x4 LB: > { %s23_s22 = sadd.s32 1, %s3774_s19  ;;  %s26_s23 = sadd.s32 1, %s3778_s20  ;;  %s3782_s21 = sphi %s3831_s21, %s14_s21   ;;  %s3778_s20 = sphi %s3829_s20, %s4954_s20   ;;  %s3774_s19 = sphi %s3827_s19, %s4953_s19   ;;  %s3770_s18 = sphi %s3825_s18, %s4952_s18   ;;  %s3766_s17 = sphi %s3823_s17, %s4951_s17   ;;  %s3762_s16 = sphi %s3821_s16, %s4950_s16   ;;  %s3758_s15 = sphi %s3819_s15, %s4949_s15  }
   0x5   : > { %p24_p0 = scmp.ge.s32.totalorder %s23_s22, 2  ;;  %p44_p1 = scmp.ne.s32.totalorder %s3762_s16, %s3758_s15 }
   0x6   : > { %p45_p2 = scmp.eq.s32.totalorder %s3782_s21, 0  ;;  %s3306_s24 = sshll.u32 %s3778_s20, 1 }
   0x7   : > { %s4956_s22 = smov (%p24_p0, %s23_s22), 0  ;;  %s4958_s23 = smov (!%p24_p0, %s26_s23), %s3778_s20 }
   0x8   : > { %p28_p3 = scmp.ge.s32.totalorder %s4958_s23, 2  ;;  %p3863_p4 = por %p45_p2, %p44_p1 }
   0x9   : > { %s3870_s26 = sadd.s32 %s3774_s19, %s3306_s24  ;;  %s37_s30 = sadd.s32 1, %s3762_s16 }
   0xa   : > { %s4960_s23 = smov (%p28_p3, %s4958_s23), 0  ;;  %p3315_p6 = scmp.ge.s32.totalorder %s3782_s21, 4 }
   0xb   : > { %s3307_s27 = sshll.u32 %s4960_s23, 1 }
   0xc   : > { %s33_s28 = sadd.s32 %s3307_s27, %s4956_s22  ;;  %186 = sbr.rel (%p3315_p6) target bundleno = 43 (0x2b), region = 16 }
   0xd   : > { %s34_s29 = ssub.s32 %s3870_s26, %s33_s28 }
   0xe   : > { %p35_p5 = scmp.eq.s32.totalorder %s34_s29, 0 }
  0x10   : > { %s3877_s5 = scalar_select %p35_p5, %s3762_s16, %s37_s30  }
  0x11   : > { %189 = sbr.rel (!%p3863_p4) target bundleno = 25 (0x19), region = 20  ;;  %s191_s6 = sand.u32 (%p3863_p4), 1, %s3762_s16  }
  0x12   : > { %s3513_s7 = sshll.u32 (%p3863_p4), %s3870_s26, 4  ;;  %s3316_s8 = sshll.u32 (%p3863_p4), %s191_s6, 6 }
  0x13   : > { %s198_s11 = scalar_lea.vmem (%p3863_p4), %s4933_s0, %s3513_s7  ;;  %s193_s12 = scalar_lea.vmem (%p3863_p4), [#allocation3], %s3316_s8 }
  0x14   : > { %v211_v0 = vld [vmem:[%s198_s11] sm:$0xff] (%p3863_p4)  ;;  %v213_v1 = vld [vmem:[%s198_s11 + $0x8] sm:$0xff] (%p3863_p4) }
  0x15   : > { %v215_v2 = vld [vmem:[%s198_s11 + $0x40] sm:$0xff] (%p3863_p4)  ;;  %212 = vst [vmem:[%s193_s12] sm:$0xff] (%p3863_p4), %v211_v0  ;;  %214 = vst [vmem:[%s193_s12 + $0x8] sm:$0xff] (%p3863_p4), %v213_v1  ;;  %v217_v3 = vld [vmem:[%s198_s11 + $0x48] sm:$0xff] (%p3863_p4) }
  0x16   : > { %216 = vst [vmem:[%s193_s12 + $0x10] sm:$0xff] %v215_v2  ;;  %v219_v4 = vld [vmem:[%s198_s11 + $0x80] sm:$0xff]  ;;  %v221_v5 = vld [vmem:[%s198_s11 + $0x88] sm:$0xff]  ;;  %218 = vst [vmem:[%s193_s12 + $0x18] sm:$0xff] %v217_v3 }
  0x17   : > { %220 = vst [vmem:[%s193_s12 + $0x20] sm:$0xff] %v219_v4  ;;  %222 = vst [vmem:[%s193_s12 + $0x28] sm:$0xff] %v221_v5  ;;  %v223_v6 = vld [vmem:[%s198_s11 + $0xc0] sm:$0xff]  ;;  %v225_v7 = vld [vmem:[%s198_s11 + $0xc8] sm:$0xff] }
  0x18   : > { %224 = vst [vmem:[%s193_s12 + $0x30] sm:$0xff] %v223_v6  ;;  %226 = vst [vmem:[%s193_s12 + $0x38] sm:$0xff] %v225_v7 }
  0x19 PF: > { %232 = sbr.rel (!%p3863_p4) target bundleno = 31 (0x1f), region = 43  ;;  %s234_s13 = sand.u32 (%p3863_p4), 1, %s3762_s16  }
  0x1a   : > { %s3514_s14 = sshll.u32 (%p3863_p4), %s3870_s26, 3  ;;  %s3320_s24 = sshll.u32 (%p3863_p4), %s234_s13, 4 }
  0x1b   : > { %s241_s29 = scalar_lea.vmem (%p3863_p4), %s4934_s1, %s3514_s14  ;;  %s236_s30 = scalar_lea.vmem (%p3863_p4), [#allocation4], %s3320_s24 }
  0x1c   : > { %v272_v8 = vld [vmem:[%s241_s29] sm:$0xff] (%p3863_p4) }
  0x1d   : > { %v274_v9 = vld [vmem:[%s241_s29 + $0x20] sm:$0xff] (%p3863_p4)  ;;  %273 = vst [vmem:[%s236_s30] sm:$0xff] (%p3863_p4), %v272_v8 }
  0x1e   : > { %275 = vst [vmem:[%s236_s30 + $0x8] sm:$0xff] %v274_v9 }
  0x1f PF: > { %281 = sbr.rel (!%p3863_p4) target bundleno = 37 (0x25), region = 81  ;;  %s283_s6 = sand.u32 (%p3863_p4), 1, %s3762_s16  }
  0x20   : > { %s3515_s7 = sshll.u32 (%p3863_p4), %s3870_s26, 3  ;;  %s3324_s8 = sshll.u32 (%p3863_p4), %s283_s6, 4 }
  0x21   : > { %s290_s11 = scalar_lea.vmem (%p3863_p4), %s4935_s2, %s3515_s7  ;;  %s285_s12 = scalar_lea.vmem (%p3863_p4), [#allocation5], %s3324_s8 }
  0x22   : > { %v321_v10 = vld [vmem:[%s290_s11] sm:$0xff] (%p3863_p4) }
  0x23   : > { %v323_v11 = vld [vmem:[%s290_s11 + $0x20] sm:$0xff] (%p3863_p4)  ;;  %322 = vst [vmem:[%s285_s12] sm:$0xff] (%p3863_p4), %v321_v10 }
  0x24   : > { %324 = vst [vmem:[%s285_s12 + $0x8] sm:$0xff] %v323_v11 }
  0x25 PF: > { %330 = sbr.rel (!%p3863_p4) target bundleno = 43 (0x2b), region = 119  ;;  %s332_s13 = sand.u32 (%p3863_p4), 1, %s3762_s16  }
  0x26   : > { %s3516_s14 = sshll.u32 (%p3863_p4), %s3870_s26, 4  ;;  %s3328_s24 = sshll.u32 (%p3863_p4), %s332_s13, 5 }
  0x27   : > { %s339_s29 = scalar_lea.vmem (%p3863_p4), %s4936_s3, %s3516_s14  ;;  %s334_s30 = scalar_lea.vmem (%p3863_p4), [#allocation6], %s3328_s24 }
  0x28   : > { %v352_v12 = vld [vmem:[%s339_s29] sm:$0xff] (%p3863_p4)  ;;  %v354_v13 = vld [vmem:[%s339_s29 + $0x8] sm:$0xff] (%p3863_p4) }
  0x29   : > { %v356_v14 = vld [vmem:[%s339_s29 + $0x40] sm:$0xff] (%p3863_p4)  ;;  %353 = vst [vmem:[%s334_s30] sm:$0xff] (%p3863_p4), %v352_v12  ;;  %355 = vst [vmem:[%s334_s30 + $0x8] sm:$0xff] (%p3863_p4), %v354_v13  ;;  %v358_v15 = vld [vmem:[%s339_s29 + $0x48] sm:$0xff] (%p3863_p4) }
  0x2a   : > { %357 = vst [vmem:[%s334_s30 + $0x10] sm:$0xff] %v356_v14  ;;  %359 = vst [vmem:[%s334_s30 + $0x18] sm:$0xff] %v358_v15 }
  0x2b PF: > { %p3332_p7 = scmp.ge.s32.totalorder %s3782_s21, 1  ;;  %p364_p8 = scmp.lt.s32.totalorder %s3782_s21, 5 }
  0x2d   : > { %p365_p9 = pnand %p3332_p7, %p364_p8 }
  0x2e   : > { %s371_s25 = sand.u32 (!%p365_p9), 1, %s3758_s15   ;;  %p441_p10 = scmp.lt.s32.totalorder (!%p365_p9), %s3770_s18, 1 }
  0x2f   : > { %368 = sbr.rel (%p365_p9) target bundleno = 517 (0x205), region = 142  ;;  %s3333_s26 = sshll.u32 (!%p365_p9), %s371_s25, 6 }
  0x30   : > { %s3334_s6 = sshll.u32 (!%p365_p9), %s371_s25, 4  ;;  %s3336_s7 = sshll.u32 (!%p365_p9), %s371_s25, 5 }
  0x31   : > { %s3918_s12 = scalar_lea.vmem (!%p365_p9), [#allocation3], %s3333_s26  ;;  %s3920_s13 = scalar_lea.vmem (!%p365_p9), [#allocation4], %s3334_s6 }
  0x32   : > { %s3922_s14 = scalar_lea.vmem (!%p365_p9), [#allocation5], %s3334_s6  ;;  %s3924_s24 = scalar_lea.vmem (!%p365_p9), [#allocation6], %s3336_s7 }
  0x33   : > { %p3339_p11 = scmp.ne.s32.totalorder (!%p365_p9), %s3766_s17, 0 }
  0x34   : > { %s4962_s18 = smov (!%p441_p10, %s3770_s18), 1 }
  0x35   : > { %s3517_s8 = sshll.u32 %s4962_s18, 8  ;;  %453 = sbr.rel (%p3339_p11) target bundleno = 75 (0x4b), region = 162 }
  0x36   : > { %s3916_s11 = scalar_lea.vmem %s4937_s4, %s3517_s8 }
  0x3a   : > { %vm454_vm0 = vcmask 56320   ;;  %vm456_vm1 = vcmask 49152   ;;  %v3788_v16 = vmov 0.0  }
  0x3b   : > { %455 = vst.msk [vmem:[#allocation2] sm:$0xff] %vm454_vm0, %v3788_v16  ;;  %458 = vst.msk [vmem:[#allocation2 + $0x10] sm:$0xff] %vm454_vm0, %v3788_v16 }
  0x3c   : > { %460 = vst.msk [vmem:[#allocation2 + $0x20] sm:$0xff] %vm454_vm0, %v3788_v16  ;;  %462 = vst.msk [vmem:[#allocation2 + $0x30] sm:$0xff] %vm454_vm0, %v3788_v16 }
  0x3d   : > { %464 = vst.msk [vmem:[#allocation2 + $0x40] sm:$0xff] %vm454_vm0, %v3788_v16  ;;  %466 = vst.msk [vmem:[#allocation2 + $0x50] sm:$0xff] %vm454_vm0, %v3788_v16 }
  0x3e   : > { %468 = vst.msk [vmem:[#allocation2 + $0x60] sm:$0xff] %vm454_vm0, %v3788_v16  ;;  %470 = vst.msk [vmem:[#allocation2 + $0x70] sm:$0xff] %vm454_vm0, %v3788_v16 }
  0x3f   : > { %472 = vst.msk [vmem:[#allocation2 + $0x80] sm:$0xff] %vm454_vm0, %v3788_v16  ;;  %474 = vst.msk [vmem:[#allocation2 + $0x90] sm:$0xff] %vm454_vm0, %v3788_v16 }
  0x40   : > { %476 = vst.msk [vmem:[#allocation2 + $0xa0] sm:$0xff] %vm454_vm0, %v3788_v16  ;;  %478 = vst.msk [vmem:[#allocation2 + $0xb0] sm:$0xff] %vm454_vm0, %v3788_v16 }
  0x41   : > { %480 = vst.msk [vmem:[#allocation2 + $0xc0] sm:$0xff] %vm454_vm0, %v3788_v16  ;;  %482 = vst.msk [vmem:[#allocation2 + $0xd0] sm:$0xff] %vm454_vm0, %v3788_v16 }
  0x42   : > { %484 = vst.msk [vmem:[#allocation2 + $0xe0] sm:$0xff] %vm454_vm0, %v3788_v16  ;;  %486 = vst.msk [vmem:[#allocation2 + $0xf0] sm:$0xff] %vm454_vm0, %v3788_v16 }
  0x43   : > { %457 = vst.msk [vmem:[#allocation2 + $0x8] sm:$0x1] %vm456_vm1, %v3788_v16  ;;  %459 = vst.msk [vmem:[#allocation2 + $0x18] sm:$0x1] %vm456_vm1, %v3788_v16 }
  0x44   : > { %461 = vst.msk [vmem:[#allocation2 + $0x28] sm:$0x1] %vm456_vm1, %v3788_v16  ;;  %463 = vst.msk [vmem:[#allocation2 + $0x38] sm:$0x1] %vm456_vm1, %v3788_v16 }
  0x45   : > { %465 = vst.msk [vmem:[#allocation2 + $0x48] sm:$0x1] %vm456_vm1, %v3788_v16  ;;  %467 = vst.msk [vmem:[#allocation2 + $0x58] sm:$0x1] %vm456_vm1, %v3788_v16 }
  0x46   : > { %469 = vst.msk [vmem:[#allocation2 + $0x68] sm:$0x1] %vm456_vm1, %v3788_v16  ;;  %471 = vst.msk [vmem:[#allocation2 + $0x78] sm:$0x1] %vm456_vm1, %v3788_v16 }
  0x47   : > { %473 = vst.msk [vmem:[#allocation2 + $0x88] sm:$0x1] %vm456_vm1, %v3788_v16  ;;  %475 = vst.msk [vmem:[#allocation2 + $0x98] sm:$0x1] %vm456_vm1, %v3788_v16 }
  0x48   : > { %477 = vst.msk [vmem:[#allocation2 + $0xa8] sm:$0x1] %vm456_vm1, %v3788_v16  ;;  %479 = vst.msk [vmem:[#allocation2 + $0xb8] sm:$0x1] %vm456_vm1, %v3788_v16 }
  0x49   : > { %481 = vst.msk [vmem:[#allocation2 + $0xc8] sm:$0x1] %vm456_vm1, %v3788_v16  ;;  %483 = vst.msk [vmem:[#allocation2 + $0xd8] sm:$0x1] %vm456_vm1, %v3788_v16 }
  0x4a   : > { %485 = vst.msk [vmem:[#allocation2 + $0xe8] sm:$0x1] %vm456_vm1, %v3788_v16  ;;  %487 = vst.msk [vmem:[#allocation2 + $0xf8] sm:$0x1] %vm456_vm1, %v3788_v16 }
  0x4b PF: > { %v488_v17 = vlaneseq  ;;  %s3965_s15 = smov 0  }
  0x4d   : > { %v3959_v18 = vshrl.u32 %v488_v17, 7 }
  0x4f   : > { %v490_v19 = vadd.s32 8, %v3959_v18  ;;  %v491_v20 = vcvt.s32.f32 %v3959_v18 }
  0x51   : > { %v492_v21 = vcvt.s32.f32 %v490_v19 }
  0x53   : > { %v3963_v22 = vpack.c.bf16 %v492_v21, %v491_v20 }
  0x54 LB: >> { %v3789_v23 = vmov 0.0   ;;  %v3790_v24 = vmov 1966171168   ;;  %s3340_s18 = sshll.u32 %s3786_s15, 7  ;;  %vm3791_vm2 = vmmov 0   ;;  %v3981_v30 = vsub.s32 0, %v3959_v18  ;;  %s3786_s15 = sphi %s3965_s15, %s499_s15  }
  0x55   : >> { %3550 = vmatprep.subr.bf16.mxu0 %v3789_v23  ;;  %v586_v25 = vunpack.c.l.s4 %v3790_v24  ;;  %3556 = vmatprep.subr.bf16.mxu1 %v3789_v23  ;;  %s501_s27 = sshra.s32 %s3340_s18, 7  ;;  %vm1523_vm9 = vcmask 1040384   ;;  %vm1524_vm10 = vsmask.f32 256  ;;  %vm1592_vm0 = vcmask 1041408   ;;  %s499_s15 = sadd.s32 1, %s3786_s15  }
  0x56   : >> { %3552 = vmatprep.mubr.msk.bf16.mxu0 %vm3791_vm2, %v3789_v23  ;;  %3558 = vmatprep.mubr.msk.bf16.mxu1 %vm3791_vm2, %v3789_v23  ;;  %s3341_s28 = sshll.u32 %s501_s27, 3  ;;  %s3342_s29 = sshll.u32 %s501_s27, 2  ;;  %vm4052_vm15 = vmand %vm1523_vm9, %vm1524_vm10  ;;  %vm1593_vm1 = vsmask.f32 1280 }
  0x57   : >> { %v587_v26 = vunpack.c.0.s8 %v586_v25  ;;  %s504_s30 = scalar_lea.vmem %s3918_s12, %s3341_s28 [#allocation3]  ;;  %s510_s25 = scalar_lea.vmem %s3920_s13, %s3342_s29 [#allocation4] }
  0x58   : >> { %v505_v27 = vld [vmem:[%s504_s30] sm:$0xff]  ;;  %v506_v28 = vld [vmem:[%s504_s30 + $0x10] sm:$0xff]  ;;  %s516_s26 = scalar_lea.vmem %s3922_s14, %s3342_s29 [#allocation5]  ;;  %s522_s6 = scalar_lea.vmem %s3924_s24, %s3341_s28 [#allocation6] }
  0x59   : >> { %v507_v29 = vld [vmem:[%s504_s30 + $0x20] sm:$0xff]  ;;  %v508_v31 = vld [vmem:[%s504_s30 + $0x30] sm:$0xff]  ;;  %v525_v34 = vmul.f32 %v506_v28, %v505_v27  ;;  %v541_v35 = vmax.f32 %v505_v27, %v506_v28  ;;  %v3984_v36 = vsub.s32 %v587_v26, %v3959_v18  ;;  %p496_p12 = scmp.ge.s32.totalorder %s499_s15, 2  }
  0x5a   : >> { %v511_v32 = vld [vmem:[%s510_s25] ss:$8 sps:$4 sm:$0xff]   ;;  %v526_v41 = vmul.f32 %v508_v31, %v507_v29  ;;  %v542_v43 = vmax.f32 %v507_v29, %v508_v31  ;;  %v524_v53 = vld [vmem:[%s522_s6 + $0x10] sm:$0xff]  ;;  %p3510_p13 = scmp.ne.s32.totalorder (%p496_p12), %s3766_s17, 1 }
  0x5b   : >> { %v517_v33 = vld [vmem:[%s516_s26] ss:$8 sps:$4 sm:$0xff]   ;;  %v513_v37 = vunpack.c.l.bf16 %v511_v32  ;;  %v514_v38 = vunpack.c.h.bf16 %v511_v32  ;;  %v529_v42 = vsub.f32 1.0, %v525_v34  ;;  %v545_v44 = vsub.f32 1.0, %v541_v35 }
  0x5c   : >> { %v519_v39 = vunpack.c.l.bf16 %v517_v33  ;;  %v520_v40 = vunpack.c.h.bf16 %v517_v33  ;;  %v530_v45 = vsub.f32 1.0, %v526_v41  ;;  %v546_v47 = vsub.f32 1.0, %v542_v43  ;;  %v523_v49 = vld [vmem:[%s522_s6] sm:$0xff] }
  0x5d   : >> { %vm543_vm5 = vcmp.eq.f32.partialorder %v513_v37, 1.0  ;;  %vm544_vm6 = vcmp.eq.f32.partialorder %v514_v38, 1.0  ;;  %vm1760_vm7 = vcmp.ge.s32.totalorder %v523_v49, 0  ;;  %vm1761_vm8 = vcmp.ge.s32.totalorder %v524_v53, 0 }
  0x5e   : >> { %vm527_vm3 = vcmp.eq.f32.partialorder %v519_v39, 1.0  ;;  %vm528_vm4 = vcmp.eq.f32.partialorder %v520_v40, 1.0  ;;  %v547_v48 = vsel %vm543_vm5, %v541_v35, %v545_v44  ;;  %v3988_v50 = vsel %vm543_vm5, 1.0, %v3789_v23 }
  0x5f   : >> { %v531_v46 = vsel %vm527_vm3, %v525_v34, %v529_v42  ;;  %v3991_v51 = vsel %vm544_vm6, 1.0, %v3789_v23  ;;  %v561_v52 = vmul.f32 %v525_v34, %v519_v39  ;;  %v532_v54 = vsel %vm528_vm4, %v526_v41, %v530_v45 }
  0x60   : >> { %3716 = vlog2.f32 %v531_v46  ;;  %v548_v55 = vsel %vm544_vm6, %v542_v43, %v546_v47  ;;  %v562_v56 = vmul.f32 %v526_v41, %v520_v40  ;;  %v581_v59 = vpack.c.bf16 %v3991_v51, %v3988_v50  ;;  %vm4135_vm6 = vmand %vm1592_vm0, %vm1593_vm1 }
  0x61   : >> { %3718 = vlog2.f32 %v547_v48  ;;  %v563_v57 = vmax.f32 %v505_v27, %v561_v52  ;;  %v565_v58 = vmax.f32 %v506_v28, %v561_v52  ;;  %vm1762_vm11 = vcmp.lt.s32.totalorder %v523_v49, 8 }
  0x62   : >> { %3720 = vlog2.f32 %v532_v54  ;;  %v564_v60 = vmax.f32 %v507_v29, %v562_v56  ;;  %v566_v61 = vmax.f32 %v508_v31, %v562_v56  ;;  %v855_v0 = vrot.slane %v581_v59, %v3984_v36  ;;  %vm1764_vm13 = vmand %vm1760_vm7, %vm1762_vm11 }
  0x63   : >> { %3722 = vlog2.f32 %v548_v55  ;;  %v3347_v62 = vadd.f32 -1.0, %v563_v57  ;;  %v3349_v63 = vadd.f32 -1.0, %v565_v58  ;;  %vm1763_vm12 = vcmp.lt.s32.totalorder %v524_v53, 8 }
  0x64   : >> { %v3348_v1 = vadd.f32 -1.0, %v564_v60  ;;  %v3350_v2 = vadd.f32 -1.0, %v566_v61  ;;  %v863_v5 = vcombine.high %v855_v0, %v855_v0  ;;  %v871_v6 = vrot.slane %v855_v0, %v3984_v36  ;;  %vm1765_vm14 = vmand %vm1761_vm8, %vm1763_vm12 }
  0x65   : >> { %v569_v3 = vmul.f32 %v3347_v62, %v3347_v62  ;;  %v573_v4 = vmul.f32 %v3349_v63, %v3349_v63  ;;  %v1766_v9 = vsel %vm1764_vm13, %v523_v49, 8  ;;  %v3355_v10 = vpack.c.bf16 %v3991_v51, %v3991_v51 }
  0x66   : >> { %v3998_v7 = vmul.f32 %v3348_v1, %v3348_v1  ;;  %v4000_v8 = vmul.f32 %v3350_v2, %v3350_v2  ;;  %v3389_v11 = vpack.i.b16 %v871_v6, %v871_v6  ;;  %v898_v12 = vunpack.i.h.s16 %v871_v6 }
  0x67   : >> { %v1767_v13 = vsel %vm1765_vm14, %v524_v53, 8  ;;  %v1768_v14 = vcvt.s32.f32 %v1766_v9  ;;  %v4009_v19 = vrot.slane %v863_v5, %v3984_v36  ;;  %v4016_v24 = vcombine.high %v871_v6, %v871_v6 }
  0x68   : >> { %v577_v15 = vpack.c.bf16 %v3998_v7, %v569_v3  ;;  %v578_v16 = vpack.c.bf16 %v4000_v8, %v573_v4  ;;  %v4006_v17 = vcvt.s32.f32 %v1767_v13  ;;  %v4012_v20 = vrot.slane %v3389_v11, %v3981_v30 }
  0x69   : >> { %v4014_v21 = vpack.i.b16 %v898_v12, %v898_v12  ;;  %v3351_v25 = vpack.c.bf16 %v3998_v7, %v3998_v7  ;;  %v3390_v29 = vpack.i.b16 %v4009_v19, %v4009_v19  ;;  %v900_v32 = vunpack.i.h.s16 %v4009_v19 }
  0x6a   : >> { %v591_v26 = vrot.slane %v577_v15, %v3984_v36  ;;  %v657_v27 = vrot.slane %v578_v16, %v3984_v36  ;;  %v1770_v28 = vpack.c.bf16 %v4006_v17, %v1768_v14  ;;  %v3391_v33 = vpack.i.b16 %v4016_v24, %v4016_v24 }
  0x6b   : >> { %v1370_v31 = vrot.slane %v4014_v21, %v3981_v30  ;;  %v902_v34 = vunpack.i.h.s16 %v4016_v24  ;;  %v4041_v44 = vrot.slane %v3390_v29, %v3981_v30  ;;  %v4043_v45 = vpack.i.b16 %v900_v32, %v900_v32 }
  0x6c   : >> { %v599_v37 = vcombine.high %v591_v26, %v591_v26  ;;  %v4032_v38 = vrot.slane %v591_v26, %v3984_v36  ;;  %v665_v39 = vcombine.high %v657_v27, %v657_v27  ;;  %v4035_v40 = vrot.slane %v657_v27, %v3984_v36 }
  0x6d   : >> { %v3717_v35 = vpop.eup %3716  ;;  %v4038_v43 = vrot.slane %v1770_v28, %v3984_v36  ;;  %vm1676_vm3 = vcmask 1042432   ;;  %vm1677_vm4 = vsmask.f32 2304 }
  0x6e   : >> { %v3719_v41 = vpop.eup %3718  ;;  %v534_v42 = vmul.f32 0.6931472, %v3717_v35  ;;  %v3357_v48 = vpack.i.b16 %v4032_v38, %v4032_v38  ;;  %v3365_v49 = vpack.i.b16 %v4035_v40, %v4035_v40  ;;  %v634_v52 = vunpack.i.h.s16 %v4032_v38  ;;  %vm4147_vm7 = vmand %vm1676_vm3, %vm1677_vm4 }
  0x6f   : >> { %v3721_v46 = vpop.eup %3720  ;;  %v550_v47 = vmul.f32 0.6931472, %v3719_v41  ;;  %v700_v57 = vunpack.i.h.s16 %v4035_v40  ;;  %v1787_v58 = vcombine.high %v4038_v43, %v4038_v43  ;;  %v4065_v6 = vrot.slane %v4038_v43, %v3984_v36 }
  0x70   : >> { %v3723_v53 = vpop.eup %3722  ;;  %v536_v54 = vmul.f32 0.6931472, %v3721_v46  ;;  %v537_v55 = vmax.f32 %v534_v42, -100.0  ;;  %v998_v61 = vrot.slane %v3357_v48, %v3981_v30  ;;  %v1094_v62 = vrot.slane %v3365_v49, %v3981_v30 }
  0x71   : >> { %v552_v59 = vmul.f32 0.6931472, %v3723_v53  ;;  %v553_v60 = vmax.f32 %v550_v47, -100.0  ;;  %v980_v1 = vpack.i.b16 %v634_v52, %v634_v52  ;;  %v1076_v2 = vpack.i.b16 %v700_v57, %v700_v57 }
  0x72   : >> { %v538_v63 = vmax.f32 %v536_v54, -100.0  ;;  %v539_v0 = vsub.f32 0.0, %v537_v55  ;;  %v1526_v5 = vsel %vm4052_vm15, %v998_v61, %v1094_v62  ;;  %v3406_v16 = vpack.i.b16 %v4065_v6, %v4065_v6 }
  0x73   : >> { %v554_v3 = vmax.f32 %v552_v59, -100.0  ;;  %v555_v4 = vsub.f32 0.0, %v553_v60  ;;  %v4071_v12 = vsel %vm1523_vm9, %v1526_v5, 1065369472  ;;  %v1002_v13 = vrot.slane %v980_v1, %v3981_v30 }
  0x74   : >> { %v4067_v9 = vsub.f32 0.0, %v538_v63  ;;  %v575_v11 = vmul.f32 %v3988_v50, %v539_v0  ;;  %v1098_v15 = vrot.slane %v1076_v2, %v3981_v30  ;;  %v4080_v26 = vrot.slane %v599_v37, %v3984_v36 }
  0x75   : >> { %v4074_v14 = vsub.f32 0.0, %v554_v3  ;;  %v4088_v28 = vrot.slane %v665_v39, %v3984_v36  ;;  %v1822_v29 = vunpack.i.h.s16 %v4065_v6  ;;  %v1856_v37 = vrot.slane %v3406_v16, %v3981_v30 }
  0x76   : >> { %v4084_v50 = vmul.f32 %v3991_v51, %v4067_v9  ;;  %v580_v27 = vpack.c.bf16 %v4067_v9, %v539_v0  ;;  %v1527_v35 = vsel %vm4052_vm15, %v1002_v13, %v1098_v15  ;;  %v3358_v41 = vpack.i.b16 %v4080_v26, %v4080_v26 }
  0x77   : >> { %v582_v32 = vpack.c.bf16 %v4074_v14, %v555_v4  ;;  %v1548_v47 = vsel %vm1523_vm9, %v1527_v35, 1065369472  ;;  %v1918_v49 = vpack.i.b16 %v1856_v37, %v1856_v37  ;;  %v3366_v53 = vpack.i.b16 %v4088_v28, %v4088_v28 }
  0x78   : >> { %v579_v42 = vpack.c.bf16 %v4084_v50, %v575_v11  ;;  %v3353_v46 = vpack.c.bf16 %v4084_v50, %v4084_v50  ;;  %v789_v39 = vrot.slane %v580_v27, %v3984_v36  ;;  %v1006_v52 = vrot.slane %v3358_v41, %v3981_v30 }
  0x79   : >> { %v921_v48 = vrot.slane %v582_v32, %v3984_v36  ;;  %v1838_v59 = vpack.i.b16 %v1822_v29, %v1822_v29  ;;  %v1923_v62 = vrot.slane %v1918_v49, %v3981_v30  ;;  %v1102_v63 = vrot.slane %v3366_v53, %v3981_v30 }
  0x7a   : >> { %v723_v54 = vrot.slane %v579_v42, %v3984_v36  ;;  %v797_v55 = vcombine.high %v789_v39, %v789_v39  ;;  %v4108_v57 = vrot.slane %v789_v39, %v3984_v36  ;;  %v3792_v37 = vmov 0  }
  0x7b   : >> { %v929_v60 = vcombine.high %v921_v48, %v921_v48  ;;  %v4111_v61 = vrot.slane %v921_v48, %v3984_v36  ;;  %vm2029_vm5 = vcmp.eq.bf16.partialorder %v1923_v62, %v3963_v22  ;;  %v1817_v24 = vcombine.high %v4065_v6, %v4065_v6 }
  0x7c   : >> { %v731_v0 = vcombine.high %v723_v54, %v723_v54  ;;  %v4116_v1 = vrot.slane %v723_v54, %v3984_v36  ;;  %v3381_v2 = vpack.i.b16 %v4108_v57, %v4108_v57  ;;  %v832_v3 = vunpack.i.h.s16 %v4108_v57 }
  0x7d   : >> { %v3397_v4 = vpack.i.b16 %v4111_v61, %v4111_v61  ;;  %v964_v5 = vunpack.i.h.s16 %v4111_v61  ;;  %v4126_v11 = vrot.slane %v797_v55, %v3984_v36  ;;  %v2045_v41 = vsel %vm2029_vm5, 65537, %v3792_v37 }
  0x7e   : >> { %v3373_v13 = vpack.i.b16 %v4116_v1, %v4116_v1  ;;  %v1286_v15 = vrot.slane %v3381_v2, %v3981_v30  ;;  %v766_v16 = vunpack.i.h.s16 %v4116_v1  ;;  %v1268_v27 = vpack.i.b16 %v832_v3, %v832_v3 }
  0x7f   : >> { %v1462_v29 = vrot.slane %v3397_v4, %v3981_v30  ;;  %v1444_v35 = vpack.i.b16 %v964_v5, %v964_v5  ;;  %v4141_v42 = vrot.slane %v731_v0, %v3984_v36  ;;  %v3414_v53 = vcombine.low %v2045_v41, %v2045_v41 }
  0x80   : >> { %v1190_v39 = vrot.slane %v3373_v13, %v3981_v30  ;;  %v1172_v48 = vpack.i.b16 %v766_v16, %v766_v16  ;;  %v1290_v49 = vrot.slane %v1268_v27, %v3981_v30  ;;  %v3415_v62 = vcombine.high %v2045_v41, %v2045_v41 }
  0x81   : >> { %v1466_v55 = vrot.slane %v1444_v35, %v3981_v30  ;;  %v4153_v2 = vrot.slane %v929_v60, %v3984_v36  ;;  %v3374_v0 = vpack.i.b16 %v4141_v42, %v4141_v42  ;;  %vm2125_vm8 = vcmp.ne.s16.totalorder %v3414_v53, 0 }
  0x82   : >> { %v1595_v3 = vsel %vm4135_vm6, %v4071_v12, %v1190_v39  ;;  %v1194_v4 = vrot.slane %v1172_v48, %v3981_v30  ;;  %v3382_v5 = vpack.i.b16 %v4126_v11, %v4126_v11  ;;  %vm2126_vm10 = vcmp.ne.s16.totalorder %v3415_v62, 0 }
  0x83   : >> { %v1614_v13 = vsel %vm1592_vm0, %v1595_v3, %v1286_v15  ;;  %v2157_v16 = vsel %vm2125_vm8, 65537, %v3792_v37  ;;  %v1198_v60 = vrot.slane %v3374_v0, %v3981_v30  ;;  %v2158_v35 = vsel %vm2126_vm10, 65537, %v3792_v37 }
  0x84   : >> { %v1679_v27 = vsel %vm4147_vm7, %v1614_v13, %v4012_v20  ;;  %v1596_v12 = vsel %vm4135_vm6, %v1548_v47, %v1194_v4  ;;  %v2189_v41 = vunpack.c.l.b16 %v2157_v16  ;;  %v2190_v15 = vunpack.c.l.b16 %v2158_v35 }
  0x85   : >> { %v1698_v39 = vsel %vm1676_vm3, %v1679_v27, %v1462_v29  ;;  %v1618_v48 = vsel %vm1592_vm0, %v1596_v12, %v1290_v49  ;;  %v1294_v53 = vrot.slane %v3382_v5, %v3981_v30  ;;  %v3398_v47 = vpack.i.b16 %v4153_v2, %v4153_v2 }
  0x86   : >> { %3551 = vmatpush3.bf16.xpose.msra.mxu0 %v1698_v39  ;;  %v1680_v20 = vsel %vm4147_vm7, %v1618_v48, %v1370_v31  ;;  %vm4180_vm11 = vcmp.ne.s32.totalorder %v2189_v41, 0  ;;  %v1528_v29 = vsel %vm4052_vm15, %v1006_v52, %v1102_v63  ;;  %vm4189_vm12 = vcmp.ne.s32.totalorder %v2190_v15, 0 }
  0x87   : >> { %v1702_v49 = vsel %vm1676_vm3, %v1680_v20, %v1466_v55  ;;  %3562 = vmatprep.subr.bf16.mxu0 %v3789_v23  ;;  %v1551_v21 = vsel %vm1523_vm9, %v1528_v29, 1065369472  ;;  %v1860_v31 = vrot.slane %v1838_v59, %v3981_v30  ;;  %v1470_v3 = vrot.slane %v3398_v47, %v3981_v30  ;;  %vm3478_vm13 = vmpackc.low %vm4189_vm12, %vm4180_vm11 }
  0x88   : >> { %3557 = vmatpush3.bf16.xpose.msra.mxu1 %v1702_v49  ;;  %v1597_v4 = vsel %vm4135_vm6, %v1551_v21, %v1198_v60  ;;  %v636_v52 = vunpack.i.h.s16 %v4080_v26  ;;  %v702_v63 = vunpack.i.h.s16 %v4088_v28  ;;  %v768_v13 = vunpack.i.h.s16 %v4141_v42 }
  0x89   : >> { %v1622_v55 = vsel %vm1592_vm0, %v1597_v4, %v1294_v53  ;;  %v1925_v5 = vpack.i.b16 %v1860_v31, %v1860_v31  ;;  %3568 = vmatprep.subr.bf16.mxu1 %v3789_v23  ;;  %v834_v16 = vunpack.i.h.s16 %v4126_v11  ;;  %v966_v60 = vunpack.i.h.s16 %v4153_v2 }
  0x8a   : >> { %v1681_v59 = vsel %vm4147_vm7, %v1622_v55, %v4041_v44  ;;  %v982_v27 = vpack.i.b16 %v636_v52, %v636_v52  ;;  %v1078_v12 = vpack.i.b16 %v702_v63, %v702_v63  ;;  %v1174_v39 = vpack.i.b16 %v768_v13, %v768_v13 }
  0x8b   : >> { %v1706_v35 = vsel %vm1676_vm3, %v1681_v59, %v1470_v3  ;;  %v1930_v41 = vrot.slane %v1925_v5, %v3981_v30  ;;  %v1270_v48 = vpack.i.b16 %v834_v16, %v834_v16  ;;  %v1378_v20 = vrot.slane %v4043_v45, %v3981_v30 }
  0x8c   : >> { %v1010_v15 = vrot.slane %v982_v27, %v3981_v30  ;;  %v1106_v53 = vrot.slane %v1078_v12, %v3981_v30  ;;  %v1446_v62 = vpack.i.b16 %v966_v60, %v966_v60  ;;  %v3793_v47 = vmov 1.0|1.0  }
  0x8d   : >> { %3553 = vmatmul.mubr.msk.bf16.vlgmr.msra.gmra.mxu0 %vm3478_vm13, %v3793_v47  ;;  %vm2030_vm14 = vcmp.eq.bf16.partialorder %v1930_v41, %v3963_v22  ;;  %v1202_v44 = vrot.slane %v1174_v39, %v3981_v30  ;;  %v1298_v29 = vrot.slane %v1270_v48, %v3981_v30  ;;  %v4227_v49 = vrot.slane %v1787_v58, %v3984_v36 }
  0x8e   : >> { %3563 = vmatpush3.bf16.xpose.msra.mxu0 %v1706_v35  ;;  %v2046_v0 = vsel %vm2030_vm14, 65537, %v3792_v37  ;;  %v1474_v45 = vrot.slane %v1446_v62, %v3981_v30  ;;  %v1529_v21 = vsel %vm4052_vm15, %v1010_v15, %v1106_v53  ;;  %3564 = vmatprep.mubr.msk.bf16.mxu0 %vm3791_vm2, %v3789_v23  ;;  %v629_v31 = vcombine.high %v4032_v38, %v4032_v38 }
  0x8f   : >> { %v3416_v3 = vcombine.low %v2046_v0, %v2046_v0  ;;  %v3417_v4 = vcombine.high %v2046_v0, %v2046_v0  ;;  %v1554_v43 = vsel %vm1523_vm9, %v1529_v21, 1065369472  ;;  %v3407_v58 = vpack.i.b16 %v4227_v49, %v4227_v49  ;;  %3574 = vmatprep.subr.bf16.mxu0 %v3789_v23 }
  0x90   : >> { %v1598_v52 = vsel %vm4135_vm6, %v1554_v43, %v1202_v44  ;;  %v695_v63 = vcombine.high %v4035_v40, %v4035_v40  ;;  %v761_v55 = vcombine.high %v4116_v1, %v4116_v1  ;;  %v827_v38 = vcombine.high %v4108_v57, %v4108_v57 }
  0x91   : >> { %vm2127_vm1 = vcmp.ne.s16.totalorder %v3416_v3, 0  ;;  %vm2128_vm4 = vcmp.ne.s16.totalorder %v3417_v4, 0  ;;  %v1626_v5 = vsel %vm1592_vm0, %v1598_v52, %v1298_v29  ;;  %v1864_v13 = vrot.slane %v3407_v58, %v3981_v30 }
  0x92   : >> { %v2159_v16 = vsel %vm2127_vm1, 65537, %v3792_v37  ;;  %v2160_v59 = vsel %vm2128_vm4, 65537, %v3792_v37  ;;  %v1682_v60 = vsel %vm4147_vm7, %v1626_v5, %v1378_v20  ;;  %v959_v40 = vcombine.high %v4111_v61, %v4111_v61 }
  0x93   : >> { %v2191_v1 = vunpack.c.l.b16 %v2159_v16  ;;  %v2192_v27 = vunpack.c.l.b16 %v2160_v59  ;;  %v1710_v57 = vsel %vm1676_vm3, %v1682_v60, %v1474_v45  ;;  %v1932_v12 = vpack.i.b16 %v1864_v13, %v1864_v13 }
  0x94   : >> { %v3359_v35 = vpack.i.b16 %v629_v31, %v629_v31  ;;  %v3367_v41 = vpack.i.b16 %v695_v63, %v695_v63  ;;  %v3375_v39 = vpack.i.b16 %v761_v55, %v761_v55  ;;  %v3383_v48 = vpack.i.b16 %v827_v38, %v827_v38 }
  0x95   : >> { %vm2223_vm5 = vcmp.ne.s32.totalorder %v2191_v1, 0  ;;  %vm2224_vm8 = vcmp.ne.s32.totalorder %v2192_v27, 0  ;;  %v1937_v15 = vrot.slane %v1932_v12, %v3981_v30  ;;  %v1382_v53 = vrot.slane %v3391_v33, %v3981_v30 }
  0x96   : >> { %vm3480_vm10 = vmpackc.low %vm2224_vm8, %vm2223_vm5  ;;  %v1014_v61 = vrot.slane %v3359_v35, %v3981_v30  ;;  %v1110_v20 = vrot.slane %v3367_v41, %v3981_v30  ;;  %v1206_v62 = vrot.slane %v3375_v39, %v3981_v30  ;;  %v1302_v44 = vrot.slane %v3383_v48, %v3981_v30 }
  0x97   : >> { %3559 = vmatmul.mubr.msk.bf16.vlgmr.msra.gmra.mxu1 %vm3480_vm10, %v3793_v47  ;;  %vm2031_vm11 = vcmp.eq.bf16.partialorder %v1937_v15, %v3963_v22  ;;  %v3399_v29 = vpack.i.b16 %v959_v40, %v959_v40  ;;  %v1824_v0 = vunpack.i.h.s16 %v4227_v49  ;;  %v638_v45 = vunpack.i.h.s16 %v629_v31 }
  0x98   : >> { %3569 = vmatpush3.bf16.xpose.msra.mxu1 %v1710_v57  ;;  %v2047_v33 = vsel %vm2031_vm11, 65537, %v3792_v37  ;;  %3570 = vmatprep.mubr.msk.bf16.mxu1 %vm3791_vm2, %v3789_v23  ;;  %v1530_v21 = vsel %vm4052_vm15, %v1014_v61, %v1110_v20  ;;  %v704_v3 = vunpack.i.h.s16 %v695_v63  ;;  %v770_v4 = vunpack.i.h.s16 %v761_v55 }
  0x99   : >> { %v3418_v43 = vcombine.low %v2047_v33, %v2047_v33  ;;  %v3419_v58 = vcombine.high %v2047_v33, %v2047_v33  ;;  %v1478_v52 = vrot.slane %v3399_v29, %v3981_v30  ;;  %v1557_v5 = vsel %vm1523_vm9, %v1530_v21, 1065369472  ;;  %3580 = vmatprep.subr.bf16.mxu1 %v3789_v23 }
  0x9a   : >> { %v1599_v31 = vsel %vm4135_vm6, %v1557_v5, %v1206_v62  ;;  %v1840_v13 = vpack.i.b16 %v1824_v0, %v1824_v0  ;;  %v836_v16 = vunpack.i.h.s16 %v827_v38  ;;  %v968_v59 = vunpack.i.h.s16 %v959_v40 }
  0x9b   : >> { %vm2129_vm12 = vcmp.ne.s16.totalorder %v3418_v43, 0  ;;  %vm2130_vm13 = vcmp.ne.s16.totalorder %v3419_v58, 0  ;;  %v1630_v60 = vsel %vm1592_vm0, %v1599_v31, %v1302_v44  ;;  %v984_v63 = vpack.i.b16 %v638_v45, %v638_v45 }
  0x9c   : >> { %v2161_v55 = vsel %vm2129_vm12, 65537, %v3792_v37  ;;  %v2162_v1 = vsel %vm2130_vm13, 65537, %v3792_v37  ;;  %v1683_v27 = vsel %vm4147_vm7, %v1630_v60, %v1382_v53  ;;  %v1868_v57 = vrot.slane %v1840_v13, %v3981_v30 }
  0x9d   : >> { %v2193_v12 = vunpack.c.l.b16 %v2161_v55  ;;  %v2194_v35 = vunpack.c.l.b16 %v2162_v1  ;;  %v1714_v41 = vsel %vm1676_vm3, %v1683_v27, %v1478_v52  ;;  %v1018_v38 = vrot.slane %v984_v63, %v3981_v30 }
  0x9e   : >> { %v1939_v40 = vpack.i.b16 %v1868_v57, %v1868_v57  ;;  %v1080_v39 = vpack.i.b16 %v704_v3, %v704_v3  ;;  %v1176_v48 = vpack.i.b16 %v770_v4, %v770_v4  ;;  %v1272_v15 = vpack.i.b16 %v836_v16, %v836_v16 }
  0x9f   : >> { %vm2225_vm14 = vcmp.ne.s32.totalorder %v2193_v12, 0  ;;  %vm2226_vm1 = vcmp.ne.s32.totalorder %v2194_v35, 0  ;;  %v1352_v61 = vpack.i.b16 %v902_v34, %v902_v34  ;;  %v1448_v20 = vpack.i.b16 %v968_v59, %v968_v59 }
  0xa0   : >> { %vm3482_vm4 = vmpackc.low %vm2226_vm1, %vm2225_vm14  ;;  %v1944_v53 = vrot.slane %v1939_v40, %v3981_v30  ;;  %v1114_v62 = vrot.slane %v1080_v39, %v3981_v30  ;;  %v1210_v44 = vrot.slane %v1176_v48, %v3981_v30  ;;  %v1306_v29 = vrot.slane %v1272_v15, %v3981_v30 }
  0xa1   : >> { %3565 = vmatmul.mubr.msk.bf16.vlgmr.msra.gmra.mxu0 %vm3482_vm4, %v3793_v47  ;;  %v1386_v0 = vrot.slane %v1352_v61, %v3981_v30  ;;  %v1482_v45 = vrot.slane %v1448_v20, %v3981_v30  ;;  %v4302_v34 = vcombine.high %v4080_v26, %v4080_v26  ;;  %v4311_v21 = vcombine.high %v4088_v28, %v4088_v28 }
  0xa2   : >> { %3575 = vmatpush3.bf16.xpose.msra.mxu0 %v1714_v41  ;;  %vm2032_vm5 = vcmp.eq.bf16.partialorder %v1944_v53, %v3963_v22  ;;  %v1531_v33 = vsel %vm4052_vm15, %v1018_v38, %v1114_v62  ;;  %3576 = vmatprep.mubr.msk.bf16.mxu0 %vm3791_vm2, %v3789_v23  ;;  %v3408_v4 = vpack.i.b16 %v1817_v24, %v1817_v24  ;;  %v1826_v62 = vunpack.i.h.s16 %v1817_v24 }
  0xa3   : >> { %v2048_v3 = vsel %vm2032_vm5, 65537, %v3792_v37  ;;  %v1560_v6 = vsel %vm1523_vm9, %v1531_v33, 1065369472  ;;  %3586 = vmatprep.subr.bf16.mxu0 %v3789_v23  ;;  %v4318_v26 = vcombine.high %v4141_v42, %v4141_v42  ;;  %v4324_v28 = vcombine.high %v4126_v11, %v4126_v11 }
  0xa4   : >> { %v3420_v43 = vcombine.low %v2048_v3, %v2048_v3  ;;  %v3421_v58 = vcombine.high %v2048_v3, %v2048_v3  ;;  %v1600_v52 = vsel %vm4135_vm6, %v1560_v6, %v1210_v44  ;;  %v1872_v31 = vrot.slane %v3408_v4, %v3981_v30 }
  0xa5   : >> { %v1634_v5 = vsel %vm1592_vm0, %v1600_v52, %v1306_v29  ;;  %v4330_v13 = vcombine.high %v4009_v19, %v4009_v19  ;;  %v4334_v42 = vcombine.high %v4153_v2, %v4153_v2  ;;  %v3360_v11 = vpack.i.b16 %v4302_v34, %v4302_v34 }
  0xa6   : >> { %vm2131_vm8 = vcmp.ne.s16.totalorder %v3420_v43, 0  ;;  %vm2132_vm10 = vcmp.ne.s16.totalorder %v3421_v58, 0  ;;  %v1684_v16 = vsel %vm4147_vm7, %v1634_v5, %v1386_v0  ;;  %v1946_v19 = vpack.i.b16 %v1872_v31, %v1872_v31 }
  0xa7   : >> { %v2163_v59 = vsel %vm2131_vm8, 65537, %v3792_v37  ;;  %v2164_v60 = vsel %vm2132_vm10, 65537, %v3792_v37  ;;  %v1718_v63 = vsel %vm1676_vm3, %v1684_v16, %v1482_v45  ;;  %v1022_v2 = vrot.slane %v3360_v11, %v3981_v30 }
  0xa8   : >> { %v2195_v55 = vunpack.c.l.b16 %v2163_v59  ;;  %v2196_v1 = vunpack.c.l.b16 %v2164_v60  ;;  %v3368_v27 = vpack.i.b16 %v4311_v21, %v4311_v21  ;;  %v1951_v57 = vrot.slane %v1946_v19, %v3981_v30 }
  0xa9   : >> { %v3376_v12 = vpack.i.b16 %v4318_v26, %v4318_v26  ;;  %v3384_v35 = vpack.i.b16 %v4324_v28, %v4324_v28  ;;  %v3392_v41 = vpack.i.b16 %v4330_v13, %v4330_v13  ;;  %v3400_v40 = vpack.i.b16 %v4334_v42, %v4334_v42 }
  0xaa   : >> { %vm2227_vm11 = vcmp.ne.s32.totalorder %v2195_v55, 0  ;;  %vm2228_vm12 = vcmp.ne.s32.totalorder %v2196_v1, 0  ;;  %v1118_v38 = vrot.slane %v3368_v27, %v3981_v30  ;;  %vm2033_vm14 = vcmp.eq.bf16.partialorder %v1951_v57, %v3963_v22 }
  0xab   : >> { %vm3484_vm13 = vmpackc.low %vm2228_vm12, %vm2227_vm11  ;;  %v1214_v39 = vrot.slane %v3376_v12, %v3981_v30  ;;  %v1310_v48 = vrot.slane %v3384_v35, %v3981_v30  ;;  %v1390_v15 = vrot.slane %v3392_v41, %v3981_v30  ;;  %v2049_v61 = vsel %vm2033_vm14, 65537, %v3792_v37 }
  0xac   : >> { %3571 = vmatmul.mubr.msk.bf16.vlgmr.msra.gmra.mxu1 %vm3484_vm13, %v3793_v47  ;;  %v1486_v20 = vrot.slane %v3400_v40, %v3981_v30  ;;  %v1532_v53 = vsel %vm4052_vm15, %v1022_v2, %v1118_v38  ;;  %v3422_v44 = vcombine.low %v2049_v61, %v2049_v61  ;;  %v3423_v29 = vcombine.high %v2049_v61, %v2049_v61 }
  0xad   : >> { %3581 = vmatpush3.bf16.xpose.msra.mxu1 %v1718_v63  ;;  %3582 = vmatprep.mubr.msk.bf16.mxu1 %vm3791_vm2, %v3789_v23  ;;  %v1563_v0 = vsel %vm1523_vm9, %v1532_v53, 1065369472  ;;  %v640_v45 = vunpack.i.h.s16 %v4302_v34  ;;  %v1842_v3 = vpack.i.b16 %v1826_v62, %v1826_v62  ;;  %v706_v6 = vunpack.i.h.s16 %v4311_v21 }
  0xae   : >> { %v1601_v33 = vsel %vm4135_vm6, %v1563_v0, %v1214_v39  ;;  %3592 = vmatprep.subr.bf16.mxu1 %v3789_v23  ;;  %v772_v24 = vunpack.i.h.s16 %v4318_v26  ;;  %vm2133_vm1 = vcmp.ne.s16.totalorder %v3422_v44, 0  ;;  %vm2134_vm4 = vcmp.ne.s16.totalorder %v3423_v29, 0 }
  0xaf   : >> { %v1638_v4 = vsel %vm1592_vm0, %v1601_v33, %v1310_v48  ;;  %v838_v43 = vunpack.i.h.s16 %v4324_v28  ;;  %v2165_v58 = vsel %vm2133_vm1, 65537, %v3792_v37  ;;  %v2166_v34 = vsel %vm2134_vm4, 65537, %v3792_v37 }
  0xb0   : >> { %v1685_v52 = vsel %vm4147_vm7, %v1638_v4, %v1390_v15  ;;  %v1876_v5 = vrot.slane %v1842_v3, %v3981_v30  ;;  %v2197_v31 = vunpack.c.l.b16 %v2165_v58  ;;  %v2198_v16 = vunpack.c.l.b16 %v2166_v34 }
  0xb1   : >> { %v1722_v21 = vsel %vm1676_vm3, %v1685_v52, %v1486_v20  ;;  %v904_v26 = vunpack.i.h.s16 %v4330_v13  ;;  %v970_v59 = vunpack.i.h.s16 %v4334_v42  ;;  %v986_v60 = vpack.i.b16 %v640_v45, %v640_v45 }
  0xb2   : >> { %v1953_v11 = vpack.i.b16 %v1876_v5, %v1876_v5  ;;  %v1082_v28 = vpack.i.b16 %v706_v6, %v706_v6  ;;  %vm2229_vm5 = vcmp.ne.s32.totalorder %v2197_v31, 0  ;;  %vm2230_vm8 = vcmp.ne.s32.totalorder %v2198_v16, 0 }
  0xb3   : >> { %v1178_v63 = vpack.i.b16 %v772_v24, %v772_v24  ;;  %v1274_v19 = vpack.i.b16 %v838_v43, %v838_v43  ;;  %vm3486_vm10 = vmpackc.low %vm2230_vm8, %vm2229_vm5  ;;  %v1026_v1 = vrot.slane %v986_v60, %v3981_v30  ;;  %v1354_v27 = vpack.i.b16 %v904_v26, %v904_v26 }
  0xb4   : >> { %v1958_v55 = vrot.slane %v1953_v11, %v3981_v30  ;;  %v1122_v2 = vrot.slane %v1082_v28, %v3981_v30  ;;  %3577 = vmatmul.mubr.msk.bf16.vlgmr.msra.gmra.mxu0 %vm3486_vm10, %v3793_v47  ;;  %v1450_v57 = vpack.i.b16 %v970_v59, %v970_v59  ;;  %v4392_v12 = vcombine.high %v4227_v49, %v4227_v49 }
  0xb5   : >> { %v1218_v13 = vrot.slane %v1178_v63, %v3981_v30  ;;  %v1314_v42 = vrot.slane %v1274_v19, %v3981_v30  ;;  %3587 = vmatpush3.bf16.xpose.msra.mxu0 %v1722_v21  ;;  %v1394_v35 = vrot.slane %v1354_v27, %v3981_v30  ;;  %3588 = vmatprep.mubr.msk.bf16.mxu0 %vm3791_vm2, %v3789_v23 }
  0xb6   : >> { %vm2034_vm11 = vcmp.eq.bf16.partialorder %v1958_v55, %v3963_v22  ;;  %v1533_v41 = vsel %vm4052_vm15, %v1026_v1, %v1122_v2  ;;  %v1490_v40 = vrot.slane %v1450_v57, %v3981_v30  ;;  %v3409_v49 = vpack.i.b16 %v4392_v12, %v4392_v12  ;;  %3598 = vmatprep.subr.bf16.mxu0 %v3789_v23 }
  0xb7   : >> { %v2050_v38 = vsel %vm2034_vm11, 65537, %v3792_v37  ;;  %v1566_v39 = vsel %vm1523_vm9, %v1533_v41, 1065369472  ;;  %v4412_v20 = vrot.slane %v3351_v25, %v3984_v36  ;;  %v3352_v44 = vpack.c.bf16 %v4000_v8, %v4000_v8 }
  0xb8   : >> { %v3424_v48 = vcombine.low %v2050_v38, %v2050_v38  ;;  %v3425_v15 = vcombine.high %v2050_v38, %v2050_v38  ;;  %v1602_v61 = vsel %vm4135_vm6, %v1566_v39, %v1218_v13  ;;  %v1880_v62 = vrot.slane %v3409_v49, %v3981_v30 }
  0xb9   : >> { %v1642_v53 = vsel %vm1592_vm0, %v1602_v61, %v1314_v42  ;;  %v4422_v29 = vrot.slane %v3353_v46, %v3984_v36  ;;  %v4428_v25 = vrot.slane %v4412_v20, %v3984_v36  ;;  %v4434_v46 = vrot.slane %v3352_v44, %v3984_v36 }
  0xba   : >> { %vm2135_vm12 = vcmp.ne.s16.totalorder %v3424_v48, 0  ;;  %vm2136_vm13 = vcmp.ne.s16.totalorder %v3425_v15, 0  ;;  %v1686_v7 = vsel %vm4147_vm7, %v1642_v53, %v1394_v35  ;;  %v1960_v33 = vpack.i.b16 %v1880_v62, %v1880_v62 }
  0xbb   : >> { %v2167_v0 = vsel %vm2135_vm12, 65537, %v3792_v37  ;;  %v2168_v45 = vsel %vm2136_vm13, 65537, %v3792_v37  ;;  %v1726_v8 = vsel %vm1676_vm3, %v1686_v7, %v1490_v40  ;;  %v4438_v6 = vrot.slane %v4422_v29, %v3984_v36 }
  0xbc   : >> { %v2199_v3 = vunpack.c.l.b16 %v2167_v0  ;;  %v2200_v50 = vunpack.c.l.b16 %v2168_v45  ;;  %v1965_v24 = vrot.slane %v1960_v33, %v3981_v30  ;;  %v3354_v4 = vpack.c.bf16 %v4067_v9, %v4067_v9 }
  0xbd   : >> { %v4447_v43 = vrot.slane %v3355_v10, %v3984_v36  ;;  %v3356_v58 = vpack.c.bf16 %v4074_v14, %v4074_v14  ;;  %v4453_v34 = vrot.slane %v4434_v46, %v3984_v36  ;;  %v3361_v52 = vpack.i.b16 %v4428_v25, %v4428_v25 }
  0xbe   : >> { %vm2231_vm14 = vcmp.ne.s32.totalorder %v2199_v3, 0  ;;  %vm2232_vm1 = vcmp.ne.s32.totalorder %v2200_v50, 0  ;;  %vm2035_vm5 = vcmp.eq.bf16.partialorder %v1965_v24, %v3963_v22  ;;  %v4459_v9 = vrot.slane %v3354_v4, %v3984_v36 }
  0xbf   : >> { %vm3488_vm4 = vmpackc.low %vm2232_vm1, %vm2231_vm14  ;;  %v4463_v51 = vrot.slane %v4447_v43, %v3984_v36  ;;  %v4466_v10 = vrot.slane %v3356_v58, %v3984_v36  ;;  %v2051_v14 = vsel %vm2035_vm5, 65537, %v3792_v37  ;;  %v1030_v5 = vrot.slane %v3361_v52, %v3981_v30 }
  0xc0   : >> { %3583 = vmatmul.mubr.msk.bf16.vlgmr.msra.gmra.mxu1 %vm3488_vm4, %v3793_v47  ;;  %v3369_v31 = vpack.i.b16 %v4453_v34, %v4453_v34  ;;  %v3377_v16 = vpack.i.b16 %v4438_v6, %v4438_v6  ;;  %v3426_v21 = vcombine.low %v2051_v14, %v2051_v14  ;;  %v3427_v26 = vcombine.high %v2051_v14, %v2051_v14 }
  0xc1   : >> { %3593 = vmatpush3.bf16.xpose.msra.mxu1 %v1726_v8  ;;  %3594 = vmatprep.mubr.msk.bf16.mxu1 %vm3791_vm2, %v3789_v23  ;;  %v4479_v11 = vrot.slane %v4459_v9, %v3984_v36  ;;  %v1828_v59 = vunpack.i.h.s16 %v4392_v12  ;;  %v4484_v60 = vrot.slane %v4466_v10, %v3984_v36  ;;  %v3393_v19 = vpack.i.b16 %v4463_v51, %v4463_v51 }
  0xc2   : >> { %v1126_v28 = vrot.slane %v3369_v31, %v3981_v30  ;;  %v1222_v63 = vrot.slane %v3377_v16, %v3981_v30  ;;  %3604 = vmatprep.subr.bf16.mxu1 %v3789_v23  ;;  %vm2137_vm8 = vcmp.ne.s16.totalorder %v3426_v21, 0  ;;  %vm2138_vm10 = vcmp.ne.s16.totalorder %v3427_v26, 0 }
  0xc3   : >> { %v3385_v55 = vpack.i.b16 %v4479_v11, %v4479_v11  ;;  %v1844_v1 = vpack.i.b16 %v1828_v59, %v1828_v59  ;;  %v2169_v2 = vsel %vm2137_vm8, 65537, %v3792_v37  ;;  %v2170_v27 = vsel %vm2138_vm10, 65537, %v3792_v37 }
  0xc4   : >> { %v1398_v13 = vrot.slane %v3393_v19, %v3981_v30  ;;  %v3401_v42 = vpack.i.b16 %v4484_v60, %v4484_v60  ;;  %v2201_v57 = vunpack.c.l.b16 %v2169_v2  ;;  %v2202_v12 = vunpack.c.l.b16 %v2170_v27 }
  0xc5   : >> { %v1318_v35 = vrot.slane %v3385_v55, %v3981_v30  ;;  %v1534_v41 = vsel %vm4052_vm15, %v1030_v5, %v1126_v28  ;;  %v1884_v39 = vrot.slane %v1844_v1, %v3981_v30  ;;  %v642_v49 = vunpack.i.h.s16 %v4428_v25 }
  0xc6   : >> { %v1494_v38 = vrot.slane %v3401_v42, %v3981_v30  ;;  %v1569_v40 = vsel %vm1523_vm9, %v1534_v41, 1065369472  ;;  %vm2233_vm11 = vcmp.ne.s32.totalorder %v2201_v57, 0  ;;  %vm2234_vm12 = vcmp.ne.s32.totalorder %v2202_v12, 0 }
  0xc7   : >> { %v1603_v48 = vsel %vm4135_vm6, %v1569_v40, %v1222_v63  ;;  %v708_v15 = vunpack.i.h.s16 %v4453_v34  ;;  %vm3490_vm13 = vmpackc.low %vm2234_vm12, %vm2233_vm11  ;;  %v1967_v53 = vpack.i.b16 %v1884_v39, %v1884_v39  ;;  %v774_v62 = vunpack.i.h.s16 %v4438_v6 }
  0xc8   : >> { %v1646_v61 = vsel %vm1592_vm0, %v1603_v48, %v1318_v35  ;;  %v840_v44 = vunpack.i.h.s16 %v4479_v11  ;;  %3589 = vmatmul.mubr.msk.bf16.vlgmr.msra.gmra.mxu0 %vm3490_vm13, %v3793_v47  ;;  %v906_v0 = vunpack.i.h.s16 %v4463_v51  ;;  %v972_v45 = vunpack.i.h.s16 %v4484_v60 }
  0xc9   : >> { %v1687_v7 = vsel %vm4147_vm7, %v1646_v61, %v1398_v13  ;;  %v988_v8 = vpack.i.b16 %v642_v49, %v642_v49  ;;  %v1972_v3 = vrot.slane %v1967_v53, %v3981_v30  ;;  %v1084_v50 = vpack.i.b16 %v708_v15, %v708_v15  ;;  %3600 = vmatprep.mubr.msk.bf16.mxu0 %vm3791_vm2, %v3789_v23 }
  0xca   : >> { %v1730_v33 = vsel %vm1676_vm3, %v1687_v7, %v1494_v38  ;;  %v1180_v24 = vpack.i.b16 %v774_v62, %v774_v62  ;;  %v1276_v58 = vpack.i.b16 %v840_v44, %v840_v44  ;;  %v1356_v52 = vpack.i.b16 %v906_v0, %v906_v0 }
  0xcb   : >> { %3599 = vmatpush3.bf16.xpose.msra.mxu0 %v1730_v33  ;;  %v1034_v4 = vrot.slane %v988_v8, %v3981_v30  ;;  %v1452_v14 = vpack.i.b16 %v972_v45, %v972_v45  ;;  %vm2036_vm14 = vcmp.eq.bf16.partialorder %v1972_v3, %v3963_v22  ;;  %v1130_v5 = vrot.slane %v1084_v50, %v3981_v30 }
  0xcc   : >> { %v1226_v31 = vrot.slane %v1180_v24, %v3981_v30  ;;  %v3405_v16 = vpack.c.bf16 %v4006_v17, %v4006_v17  ;;  %3610 = vmatprep.subr.bf16.mxu0 %v3789_v23  ;;  %v2052_v21 = vsel %vm2036_vm14, 65537, %v3792_v37  ;;  %v1322_v26 = vrot.slane %v1276_v58, %v3981_v30 }
  0xcd   : >> { %v1402_v59 = vrot.slane %v1356_v52, %v3981_v30  ;;  %v1498_v28 = vrot.slane %v1452_v14, %v3981_v30  ;;  %v3428_v63 = vcombine.low %v2052_v21, %v2052_v21  ;;  %v3429_v19 = vcombine.high %v2052_v21, %v2052_v21 }
  0xce   : >> { %v1535_v55 = vsel %vm4052_vm15, %v1034_v4, %v1130_v5  ;;  %v4534_v1 = vrot.slane %v3405_v16, %v3984_v36  ;;  %v600_v2 = vcombine.high %v4412_v20, %v4412_v20  ;;  %v666_v27 = vcombine.high %v4434_v46, %v4434_v46 }
  0xcf   : >> { %v1572_v17 = vsel %vm1523_vm9, %v1535_v55, 1065369472  ;;  %v732_v13 = vcombine.high %v4422_v29, %v4422_v29  ;;  %vm2139_vm1 = vcmp.ne.s16.totalorder %v3428_v63, 0  ;;  %vm2140_vm4 = vcmp.ne.s16.totalorder %v3429_v19, 0 }
  0xd0   : >> { %v1604_v42 = vsel %vm4135_vm6, %v1572_v17, %v1226_v31  ;;  %v4547_v57 = vrot.slane %v4534_v1, %v3984_v36  ;;  %v2171_v12 = vsel %vm2139_vm1, 65537, %v3792_v37  ;;  %v2172_v35 = vsel %vm2140_vm4, 65537, %v3792_v37 }
  0xd1   : >> { %v1650_v20 = vsel %vm1592_vm0, %v1604_v42, %v1322_v26  ;;  %v4553_v46 = vrot.slane %v600_v2, %v3984_v36  ;;  %v2203_v41 = vunpack.c.l.b16 %v2171_v12  ;;  %v2204_v29 = vunpack.c.l.b16 %v2172_v35 }
  0xd2   : >> { %v1688_v38 = vsel %vm4147_vm7, %v1650_v20, %v1402_v59  ;;  %v3410_v40 = vpack.i.b16 %v4547_v57, %v4547_v57  ;;  %v4561_v49 = vrot.slane %v666_v27, %v3984_v36  ;;  %v4564_v48 = vrot.slane %v732_v13, %v3984_v36 }
  0xd3   : >> { %v1734_v39 = vsel %vm1676_vm3, %v1688_v38, %v1498_v28  ;;  %v798_v15 = vcombine.high %v4459_v9, %v4459_v9  ;;  %vm2235_vm5 = vcmp.ne.s32.totalorder %v2203_v41, 0  ;;  %vm2236_vm8 = vcmp.ne.s32.totalorder %v2204_v29, 0 }
  0xd4   : >> { %v1888_v61 = vrot.slane %v3410_v40, %v3981_v30  ;;  %v864_v53 = vcombine.high %v4447_v43, %v4447_v43  ;;  %vm3492_vm10 = vmpackc.low %vm2236_vm8, %vm2235_vm5  ;;  %v930_v44 = vcombine.high %v4466_v10, %v4466_v10  ;;  %v3362_v7 = vpack.i.b16 %v4553_v46, %v4553_v46 }
  0xd5   : >> { %v4572_v62 = vrot.slane %v798_v15, %v3984_v36  ;;  %v3370_v9 = vpack.i.b16 %v4561_v49, %v4561_v49  ;;  %3595 = vmatmul.mubr.msk.bf16.vlgmr.msra.gmra.mxu1 %vm3492_vm10, %v3793_v47  ;;  %v3378_v43 = vpack.i.b16 %v4564_v48, %v4564_v48  ;;  %v1830_v8 = vunpack.i.h.s16 %v4547_v57 }
  0xd6   : >> { %v1974_v0 = vpack.i.b16 %v1888_v61, %v1888_v61  ;;  %v4582_v45 = vrot.slane %v864_v53, %v3984_v36  ;;  %3605 = vmatpush3.bf16.xpose.msra.mxu1 %v1734_v39  ;;  %3606 = vmatprep.mubr.msk.bf16.mxu1 %vm3791_vm2, %v3789_v23  ;;  %v4590_v10 = vrot.slane %v930_v44, %v3984_v36  ;;  %v644_v50 = vunpack.i.h.s16 %v4553_v46 }
  0xd7   : >> { %v1038_v33 = vrot.slane %v3362_v7, %v3981_v30  ;;  %v1134_v3 = vrot.slane %v3370_v9, %v3981_v30  ;;  %v1230_v4 = vrot.slane %v3378_v43, %v3981_v30  ;;  %v3386_v58 = vpack.i.b16 %v4572_v62, %v4572_v62  ;;  %3616 = vmatprep.subr.bf16.mxu1 %v3789_v23 }
  0xd8   : >> { %v1979_v24 = vrot.slane %v1974_v0, %v3981_v30  ;;  %v3394_v52 = vpack.i.b16 %v4582_v45, %v4582_v45  ;;  %v3402_v14 = vpack.i.b16 %v4590_v10, %v4590_v10  ;;  %v1846_v31 = vpack.i.b16 %v1830_v8, %v1830_v8 }
  0xd9   : >> { %v1536_v5 = vsel %vm4052_vm15, %v1038_v33, %v1134_v3  ;;  %v710_v16 = vunpack.i.h.s16 %v4561_v49  ;;  %v1326_v21 = vrot.slane %v3386_v58, %v3981_v30  ;;  %v776_v13 = vunpack.i.h.s16 %v4564_v48 }
  0xda   : >> { %vm2037_vm11 = vcmp.eq.bf16.partialorder %v1979_v24, %v3963_v22  ;;  %v1406_v26 = vrot.slane %v3394_v52, %v3981_v30  ;;  %v1575_v59 = vsel %vm1523_vm9, %v1536_v5, 1065369472  ;;  %v1502_v63 = vrot.slane %v3402_v14, %v3981_v30 }
  0xdb   : >> { %v2053_v28 = vsel %vm2037_vm11, 65537, %v3792_v37  ;;  %v1605_v19 = vsel %vm4135_vm6, %v1575_v59, %v1230_v4  ;;  %v1892_v55 = vrot.slane %v1846_v31, %v3981_v30  ;;  %v842_v35 = vunpack.i.h.s16 %v4572_v62 }
  0xdc   : >> { %v3430_v17 = vcombine.low %v2053_v28, %v2053_v28  ;;  %v3431_v2 = vcombine.high %v2053_v28, %v2053_v28  ;;  %v1654_v27 = vsel %vm1592_vm0, %v1605_v19, %v1326_v21  ;;  %v908_v20 = vunpack.i.h.s16 %v4582_v45 }
  0xdd   : >> { %v1689_v42 = vsel %vm4147_vm7, %v1654_v27, %v1406_v26  ;;  %v1981_v12 = vpack.i.b16 %v1892_v55, %v1892_v55  ;;  %v974_v29 = vunpack.i.h.s16 %v4590_v10  ;;  %v990_v15 = vpack.i.b16 %v644_v50, %v644_v50 }
  0xde   : >> { %vm2141_vm12 = vcmp.ne.s16.totalorder %v3430_v17, 0  ;;  %vm2142_vm13 = vcmp.ne.s16.totalorder %v3431_v2, 0  ;;  %v1738_v41 = vsel %vm1676_vm3, %v1689_v42, %v1502_v63  ;;  %v1086_v44 = vpack.i.b16 %v710_v16, %v710_v16 }
  0xdf   : >> { %v2173_v38 = vsel %vm2141_vm12, 65537, %v3792_v37  ;;  %v2174_v40 = vsel %vm2142_vm13, 65537, %v3792_v37  ;;  %v1986_v39 = vrot.slane %v1981_v12, %v3981_v30  ;;  %v1182_v7 = vpack.i.b16 %v776_v13, %v776_v13 }
  0xe0   : >> { %v2205_v61 = vunpack.c.l.b16 %v2173_v38  ;;  %v2206_v53 = vunpack.c.l.b16 %v2174_v40  ;;  %v1042_v9 = vrot.slane %v990_v15, %v3981_v30  ;;  %v1278_v0 = vpack.i.b16 %v842_v35, %v842_v35 }
  0xe1   : >> { %vm2038_vm14 = vcmp.eq.bf16.partialorder %v1986_v39, %v3963_v22  ;;  %v1358_v43 = vpack.i.b16 %v908_v20, %v908_v20  ;;  %v1138_v33 = vrot.slane %v1086_v44, %v3981_v30  ;;  %v1234_v50 = vrot.slane %v1182_v7, %v3981_v30 }
  0xe2   : >> { %vm2237_vm1 = vcmp.ne.s32.totalorder %v2205_v61, 0  ;;  %vm2238_vm4 = vcmp.ne.s32.totalorder %v2206_v53, 0  ;;  %v2054_v8 = vsel %vm2038_vm14, 65537, %v3792_v37  ;;  %v1330_v4 = vrot.slane %v1278_v0, %v3981_v30 }
  0xe3   : >> { %vm3494_vm5 = vmpackc.low %vm2238_vm4, %vm2237_vm1  ;;  %v3432_v3 = vcombine.low %v2054_v8, %v2054_v8  ;;  %v3433_v24 = vcombine.high %v2054_v8, %v2054_v8  ;;  %v1410_v58 = vrot.slane %v1358_v43, %v3981_v30  ;;  %v1454_v52 = vpack.i.b16 %v974_v29, %v974_v29 }
  0xe4   : >> { %3601 = vmatmul.mubr.msk.bf16.vlgmr.msra.gmra.mxu0 %vm3494_vm5, %v3793_v47  ;;  %v1537_v14 = vsel %vm4052_vm15, %v1042_v9, %v1138_v33  ;;  %v1788_v5 = vcombine.high %v4534_v1, %v4534_v1  ;;  %v630_v16 = vcombine.high %v4428_v25, %v4428_v25  ;;  %v696_v17 = vcombine.high %v4453_v34, %v4453_v34 }
  0xe5   : >> { %3611 = vmatpush3.bf16.xpose.msra.mxu0 %v1738_v41  ;;  %vm2143_vm8 = vcmp.ne.s16.totalorder %v3432_v3, 0  ;;  %vm2144_vm10 = vcmp.ne.s16.totalorder %v3433_v24, 0  ;;  %v1578_v31 = vsel %vm1523_vm9, %v1537_v14, 1065369472  ;;  %3612 = vmatprep.mubr.msk.bf16.mxu0 %vm3791_vm2, %v3789_v23  ;;  %v1506_v59 = vrot.slane %v1454_v52, %v3981_v30 }
  0xe6   : >> { %v2175_v21 = vsel %vm2143_vm8, 65537, %v3792_v37  ;;  %v2176_v26 = vsel %vm2144_vm10, 65537, %v3792_v37  ;;  %v1606_v1 = vsel %vm4135_vm6, %v1578_v31, %v1234_v50  ;;  %3622 = vmatprep.subr.bf16.mxu0 %v3789_v23  ;;  %v4652_v55 = vrot.slane %v1788_v5, %v3984_v36 }
  0xe7   : >> { %v2207_v28 = vunpack.c.l.b16 %v2175_v21  ;;  %v2208_v63 = vunpack.c.l.b16 %v2176_v26  ;;  %v1658_v19 = vsel %vm1592_vm0, %v1606_v1, %v1330_v4  ;;  %v762_v2 = vcombine.high %v4438_v6, %v4438_v6 }
  0xe8   : >> { %v1690_v25 = vsel %vm4147_vm7, %v1658_v19, %v1410_v58  ;;  %v828_v27 = vcombine.high %v4479_v11, %v4479_v11  ;;  %v3411_v36 = vpack.i.b16 %v4652_v55, %v4652_v55  ;;  %v894_v42 = vcombine.high %v4463_v51, %v4463_v51 }
  0xe9   : >> { %vm2239_vm11 = vcmp.ne.s32.totalorder %v2207_v28, 0  ;;  %vm2240_vm12 = vcmp.ne.s32.totalorder %v2208_v63, 0  ;;  %v1742_v13 = vsel %vm1676_vm3, %v1690_v25, %v1506_v59  ;;  %v960_v34 = vcombine.high %v4484_v60, %v4484_v60 }
  0xea   : >> { %vm3496_vm13 = vmpackc.low %vm2240_vm12, %vm2239_vm11  ;;  %v3363_v12 = vpack.i.b16 %v630_v16, %v630_v16  ;;  %v3371_v35 = vpack.i.b16 %v696_v17, %v696_v17  ;;  %v1896_v6 = vrot.slane %v3411_v36, %v3981_v30  ;;  %v3379_v11 = vpack.i.b16 %v762_v2, %v762_v2 }
  0xeb   : >> { %3607 = vmatmul.mubr.msk.bf16.vlgmr.msra.gmra.mxu1 %vm3496_vm13, %v3793_v47  ;;  %v3387_v20 = vpack.i.b16 %v828_v27, %v828_v27  ;;  %v1832_v41 = vunpack.i.h.s16 %v4652_v55  ;;  %v3395_v38 = vpack.i.b16 %v894_v42, %v894_v42  ;;  %v646_v60 = vunpack.i.h.s16 %v630_v16 }
  0xec   : >> { %3617 = vmatpush3.bf16.xpose.msra.mxu1 %v1742_v13  ;;  %3618 = vmatprep.mubr.msk.bf16.mxu1 %vm3791_vm2, %v3789_v23  ;;  %v1046_v29 = vrot.slane %v3363_v12, %v3981_v30  ;;  %v1142_v51 = vrot.slane %v3371_v35, %v3981_v30  ;;  %v1988_v40 = vpack.i.b16 %v1896_v6, %v1896_v6  ;;  %v712_v9 = vunpack.i.h.s16 %v696_v17 }
  0xed   : >> { %v1238_v39 = vrot.slane %v3379_v11, %v3981_v30  ;;  %v1334_v15 = vrot.slane %v3387_v20, %v3981_v30  ;;  %v3403_v61 = vpack.i.b16 %v960_v34, %v960_v34  ;;  %3628 = vmatprep.subr.bf16.mxu1 %v3789_v23  ;;  %v1414_v53 = vrot.slane %v3395_v38, %v3981_v30 }
  0xee   : >> { %v1538_v44 = vsel %vm4052_vm15, %v1046_v29, %v1142_v51  ;;  %v1848_v7 = vpack.i.b16 %v1832_v41, %v1832_v41  ;;  %v1993_v0 = vrot.slane %v1988_v40, %v3981_v30  ;;  %v778_v33 = vunpack.i.h.s16 %v762_v2 }
  0xef   : >> { %v1510_v43 = vrot.slane %v3403_v61, %v3981_v30  ;;  %v1581_v8 = vsel %vm1523_vm9, %v1538_v44, 1065369472  ;;  %v844_v50 = vunpack.i.h.s16 %v828_v27  ;;  %v910_v4 = vunpack.i.h.s16 %v894_v42 }
  0xf0   : >> { %v1607_v3 = vsel %vm4135_vm6, %v1581_v8, %v1238_v39  ;;  %v1900_v24 = vrot.slane %v1848_v7, %v3981_v30  ;;  %vm2039_vm14 = vcmp.eq.bf16.partialorder %v1993_v0, %v3963_v22  ;;  %v976_v52 = vunpack.i.h.s16 %v960_v34 }
  0xf1   : >> { %v1662_v58 = vsel %vm1592_vm0, %v1607_v3, %v1334_v15  ;;  %v992_v14 = vpack.i.b16 %v646_v60, %v646_v60  ;;  %v2055_v5 = vsel %vm2039_vm14, 65537, %v3792_v37  ;;  %v1088_v21 = vpack.i.b16 %v712_v9, %v712_v9 }
  0xf2   : >> { %v1691_v31 = vsel %vm4147_vm7, %v1662_v58, %v1414_v53  ;;  %v1995_v16 = vpack.i.b16 %v1900_v24, %v1900_v24  ;;  %v3434_v26 = vcombine.low %v2055_v5, %v2055_v5  ;;  %v3435_v59 = vcombine.high %v2055_v5, %v2055_v5 }
  0xf3   : >> { %v1746_v1 = vsel %vm1676_vm3, %v1691_v31, %v1510_v43  ;;  %v1050_v28 = vrot.slane %v992_v14, %v3981_v30  ;;  %v1146_v19 = vrot.slane %v1088_v21, %v3981_v30  ;;  %v1184_v25 = vpack.i.b16 %v778_v33, %v778_v33 }
  0xf4   : >> { %v2000_v63 = vrot.slane %v1995_v16, %v3981_v30  ;;  %v1280_v17 = vpack.i.b16 %v844_v50, %v844_v50  ;;  %vm2145_vm1 = vcmp.ne.s16.totalorder %v3434_v26, 0  ;;  %vm2146_vm4 = vcmp.ne.s16.totalorder %v3435_v59, 0 }
  0xf5   : >> { %v1360_v2 = vpack.i.b16 %v910_v4, %v910_v4  ;;  %v1456_v27 = vpack.i.b16 %v976_v52, %v976_v52  ;;  %v2177_v13 = vsel %vm2145_vm1, 65537, %v3792_v37  ;;  %v2178_v36 = vsel %vm2146_vm4, 65537, %v3792_v37 }
  0xf6   : >> { %vm2040_vm5 = vcmp.eq.bf16.partialorder %v2000_v63, %v3963_v22  ;;  %v1242_v42 = vrot.slane %v1184_v25, %v3981_v30  ;;  %v2209_v34 = vunpack.c.l.b16 %v2177_v13  ;;  %v2210_v12 = vunpack.c.l.b16 %v2178_v36 }
  0xf7   : >> { %v2056_v35 = vsel %vm2040_vm5, 65537, %v3792_v37  ;;  %v1338_v6 = vrot.slane %v1280_v17, %v3981_v30  ;;  %v1418_v41 = vrot.slane %v1360_v2, %v3981_v30  ;;  %v1514_v29 = vrot.slane %v1456_v27, %v3981_v30 }
  0xf8   : >> { %v3436_v11 = vcombine.low %v2056_v35, %v2056_v35  ;;  %v3437_v20 = vcombine.high %v2056_v35, %v2056_v35  ;;  %vm2241_vm8 = vcmp.ne.s32.totalorder %v2209_v34, 0  ;;  %vm2242_vm10 = vcmp.ne.s32.totalorder %v2210_v12, 0 }
  0xf9   : >> { %v1539_v51 = vsel %vm4052_vm15, %v1050_v28, %v1146_v19  ;;  %v1818_v38 = vcombine.high %v4547_v57, %v4547_v57  ;;  %vm3498_vm11 = vmpackc.low %vm2242_vm10, %vm2241_vm8  ;;  %v4712_v40 = vcombine.high %v4553_v46, %v4553_v46  ;;  %v698_v46 = vcombine.high %v4561_v49, %v4561_v49 }
  0xfa   : >> { %vm2147_vm12 = vcmp.ne.s16.totalorder %v3436_v11, 0  ;;  %vm2148_vm13 = vcmp.ne.s16.totalorder %v3437_v20, 0  ;;  %v1584_v60 = vsel %vm1523_vm9, %v1539_v51, 1065369472  ;;  %3613 = vmatmul.mubr.msk.bf16.vlgmr.msra.gmra.mxu0 %vm3498_vm11, %v3793_v47  ;;  %v764_v43 = vcombine.high %v4564_v48, %v4564_v48 }
  0xfb   : >> { %v2179_v39 = vsel %vm2147_vm12, 65537, %v3792_v37  ;;  %v2180_v15 = vsel %vm2148_vm13, 65537, %v3792_v37  ;;  %v1608_v61 = vsel %vm4135_vm6, %v1584_v60, %v1242_v42  ;;  %v3412_v53 = vpack.i.b16 %v1818_v38, %v1818_v38  ;;  %3623 = vmatpush3.bf16.xpose.msra.mxu0 %v1746_v1  ;;  %3624 = vmatprep.mubr.msk.bf16.mxu0 %vm3791_vm2, %v3789_v23 }
  0xfc   : >> { %v2211_v57 = vunpack.c.l.b16 %v2179_v39  ;;  %v2212_v44 = vunpack.c.l.b16 %v2180_v15  ;;  %v1666_v7 = vsel %vm1592_vm0, %v1608_v61, %v1338_v6  ;;  %3634 = vmatprep.subr.bf16.mxu0 %v3789_v23  ;;  %v830_v8 = vcombine.high %v4572_v62, %v4572_v62 }
  0xfd   : >> { %v1692_v9 = vsel %vm4147_vm7, %v1666_v7, %v1418_v41  ;;  %v1904_v0 = vrot.slane %v3412_v53, %v3981_v30  ;;  %v896_v49 = vcombine.high %v4582_v45, %v4582_v45  ;;  %v4737_v24 = vcombine.high %v4590_v10, %v4590_v10 }
  0xfe   : >> { %vm2243_vm14 = vcmp.ne.s32.totalorder %v2211_v57, 0  ;;  %vm2244_vm1 = vcmp.ne.s32.totalorder %v2212_v44, 0  ;;  %v1750_v33 = vsel %vm1676_vm3, %v1692_v9, %v1514_v29  ;;  %v3364_v50 = vpack.i.b16 %v4712_v40, %v4712_v40 }
  0xff   : >> { %vm3500_vm4 = vmpackc.low %vm2244_vm1, %vm2243_vm14  ;;  %v2002_v3 = vpack.i.b16 %v1904_v0, %v1904_v0  ;;  %v3372_v48 = vpack.i.b16 %v698_v46, %v698_v46  ;;  %v3380_v62 = vpack.i.b16 %v764_v43, %v764_v43  ;;  %v3388_v4 = vpack.i.b16 %v830_v8, %v830_v8 }
 0x100   : >> { %3619 = vmatmul.mubr.msk.bf16.vlgmr.msra.gmra.mxu1 %vm3500_vm4, %v3793_v47  ;;  %v3396_v58 = vpack.i.b16 %v896_v49, %v896_v49  ;;  %v1834_v52 = vunpack.i.h.s16 %v1818_v38  ;;  %v1054_v45 = vrot.slane %v3364_v50, %v3981_v30  ;;  %v648_v5 = vunpack.i.h.s16 %v4712_v40 }
 0x101   : >> { %3629 = vmatpush3.bf16.xpose.msra.mxu1 %v1750_v33  ;;  %v2007_v14 = vrot.slane %v2002_v3, %v3981_v30  ;;  %3630 = vmatprep.mubr.msk.bf16.mxu1 %vm3791_vm2, %v3789_v23  ;;  %v1150_v10 = vrot.slane %v3372_v48, %v3981_v30  ;;  %v1246_v31 = vrot.slane %v3380_v62, %v3981_v30  ;;  %v714_v28 = vunpack.i.h.s16 %v698_v46 }
 0x102   : >> { %v1342_v16 = vrot.slane %v3388_v4, %v3981_v30  ;;  %v1422_v21 = vrot.slane %v3396_v58, %v3981_v30  ;;  %v3404_v26 = vpack.i.b16 %v4737_v24, %v4737_v24  ;;  %3640 = vmatprep.subr.bf16.mxu1 %v3789_v23  ;;  %v1850_v1 = vpack.i.b16 %v1834_v52, %v1834_v52 }
 0x103   : >> { %vm2041_vm5 = vcmp.eq.bf16.partialorder %v2007_v14, %v3963_v22  ;;  %v1540_v59 = vsel %vm4052_vm15, %v1054_v45, %v1150_v10  ;;  %v780_v17 = vunpack.i.h.s16 %v764_v43  ;;  %v846_v34 = vunpack.i.h.s16 %v830_v8 }
 0x104   : >> { %v2057_v63 = vsel %vm2041_vm5, 65537, %v3792_v37  ;;  %v1518_v19 = vrot.slane %v3404_v26, %v3981_v30  ;;  %v1587_v25 = vsel %vm1523_vm9, %v1540_v59, 1065369472  ;;  %v1908_v36 = vrot.slane %v1850_v1, %v3981_v30 }
 0x105   : >> { %v3438_v2 = vcombine.low %v2057_v63, %v2057_v63  ;;  %v3439_v27 = vcombine.high %v2057_v63, %v2057_v63  ;;  %v1609_v13 = vsel %vm4135_vm6, %v1587_v25, %v1246_v31  ;;  %v912_v12 = vunpack.i.h.s16 %v896_v49 }
 0x106   : >> { %v1670_v42 = vsel %vm1592_vm0, %v1609_v13, %v1342_v16  ;;  %v978_v35 = vunpack.i.h.s16 %v4737_v24  ;;  %v2009_v11 = vpack.i.b16 %v1908_v36, %v1908_v36  ;;  %v994_v51 = vpack.i.b16 %v648_v5, %v648_v5 }
 0x107   : >> { %vm2149_vm8 = vcmp.ne.s16.totalorder %v3438_v2, 0  ;;  %vm2150_vm10 = vcmp.ne.s16.totalorder %v3439_v27, 0  ;;  %v1693_v6 = vsel %vm4147_vm7, %v1670_v42, %v1422_v21  ;;  %v1090_v39 = vpack.i.b16 %v714_v28, %v714_v28 }
 0x108   : >> { %v2181_v20 = vsel %vm2149_vm8, 65537, %v3792_v37  ;;  %v2182_v41 = vsel %vm2150_vm10, 65537, %v3792_v37  ;;  %v1754_v29 = vsel %vm1676_vm3, %v1693_v6, %v1518_v19  ;;  %v2014_v40 = vrot.slane %v2009_v11, %v3981_v30  ;;  %v2334_v11 = vld [vmem:[#allocation2 + $0x8] sm:$0x1] }
 0x109   : >> { %v2213_v38 = vunpack.c.l.b16 %v2181_v20  ;;  %v2214_v60 = vunpack.c.l.b16 %v2182_v41  ;;  %v1058_v15 = vrot.slane %v994_v51, %v3981_v30  ;;  %v1186_v61 = vpack.i.b16 %v780_v17, %v780_v17 }
 0x10a   : >> { %v1282_v53 = vpack.i.b16 %v846_v34, %v846_v34  ;;  %v1362_v57 = vpack.i.b16 %v912_v12, %v912_v12  ;;  %vm2042_vm13 = vcmp.eq.bf16.partialorder %v2014_v40, %v3963_v22  ;;  %v1154_v44 = vrot.slane %v1090_v39, %v3981_v30  ;;  %v2333_v34 = vld [vmem:[#allocation2] sm:$0xff]  ;;  %v2336_v40 = vld [vmem:[#allocation2 + $0x18] sm:$0x1] }
 0x10b   : >> { %vm2245_vm11 = vcmp.ne.s32.totalorder %v2213_v38, 0  ;;  %vm2246_vm12 = vcmp.ne.s32.totalorder %v2214_v60, 0  ;;  %v2058_v7 = vsel %vm2042_vm13, 65537, %v3792_v37  ;;  %v1250_v46 = vrot.slane %v1186_v61, %v3981_v30  ;;  %v2337_v61 = vld [vmem:[#allocation2 + $0x20] sm:$0xff] }
 0x10c   : >> { %vm3502_vm14 = vmpackc.low %vm2246_vm12, %vm2245_vm11  ;;  %v1346_v9 = vrot.slane %v1282_v53, %v3981_v30  ;;  %v1426_v0 = vrot.slane %v1362_v57, %v3981_v30  ;;  %v3440_v43 = vcombine.low %v2058_v7, %v2058_v7  ;;  %v3441_v8 = vcombine.high %v2058_v7, %v2058_v7  ;;  %v2338_v7 = vld [vmem:[#allocation2 + $0x28] sm:$0x1] }
 0x10d   : >> { %3625 = vmatmul.mubr.msk.bf16.vlgmr.msra.gmra.mxu0 %vm3502_vm14, %v3793_v47  ;;  %v1458_v33 = vpack.i.b16 %v978_v35, %v978_v35  ;;  %v1541_v49 = vsel %vm4052_vm15, %v1058_v15, %v1154_v44  ;;  %v1820_v24 = vcombine.high %v4652_v55, %v4652_v55 }
 0x10e   : >> { %3635 = vmatpush3.bf16.xpose.msra.mxu0 %v1754_v29  ;;  %v1590_v3 = vsel %vm1523_vm9, %v1541_v49, 1065369472  ;;  %3636 = vmatprep.mubr.msk.bf16.mxu0 %vm3791_vm2, %v3789_v23  ;;  %vm2151_vm1 = vcmp.ne.s16.totalorder %v3440_v43, 0  ;;  %vm2152_vm4 = vcmp.ne.s16.totalorder %v3441_v8, 0  ;;  %v2335_v29 = vld [vmem:[#allocation2 + $0x10] sm:$0xff] }
 0x10f   : >> { %v1522_v50 = vrot.slane %v1458_v33, %v3981_v30  ;;  %v1610_v48 = vsel %vm4135_vm6, %v1590_v3, %v1250_v46  ;;  %v2183_v62 = vsel %vm2151_vm1, 65537, %v3792_v37  ;;  %v2184_v56 = vsel %vm2152_vm4, 65537, %v3792_v37  ;;  %v2339_v43 = vld [vmem:[#allocation2 + $0x30] sm:$0xff]  ;;  %v2340_v3 = vld [vmem:[#allocation2 + $0x38] sm:$0x1] }
 0x110   : >> { %v1674_v4 = vsel %vm1592_vm0, %v1610_v48, %v1346_v9  ;;  %v3413_v58 = vpack.i.b16 %v1820_v24, %v1820_v24  ;;  %v2215_v52 = vunpack.c.l.b16 %v2183_v62  ;;  %v2216_v14 = vunpack.c.l.b16 %v2184_v56  ;;  %v2341_v62 = vld [vmem:[#allocation2 + $0x40] sm:$0xff] }
 0x111   : >> { %v1694_v45 = vsel %vm4147_vm7, %v1674_v4, %v1426_v0  ;;  %v1836_v55 = vunpack.i.h.s16 %v1820_v24  ;;  %vm3053_vm4 = vcmask 56320  }
 0x112   : >> { %v1912_v10 = vrot.slane %v3413_v58, %v3981_v30  ;;  %vm2247_vm9 = vcmp.ne.s32.totalorder %v2215_v52, 0  ;;  %vm2248_vm15 = vcmp.ne.s32.totalorder %v2216_v14, 0  ;;  %v1758_v32 = vsel %vm1676_vm3, %v1694_v45, %v1522_v50  ;;  %v2342_v52 = vld [vmem:[#allocation2 + $0x48] sm:$0x1] }
 0x113   : >> { %v1852_v5 = vpack.i.b16 %v1836_v55, %v1836_v55  ;;  %vm3504_vm6 = vmpackc.low %vm2248_vm15, %vm2247_vm9  ;;  %vm3055_vm9 = vcmask 49152  }
 0x114   : >> { %v2016_v31 = vpack.i.b16 %v1912_v10, %v1912_v10  ;;  %3631 = vmatmul.mubr.msk.bf16.vlgmr.msra.gmra.mxu1 %vm3504_vm6, %v3793_v47  ;;  %v2343_v10 = vld [vmem:[#allocation2 + $0x50] sm:$0xff] }
 0x115   : >> { %v1916_v16 = vrot.slane %v1852_v5, %v3981_v30  ;;  %3641 = vmatpush3.bf16.xpose.msra.mxu1 %v1758_v32  ;;  %3642 = vmatprep.mubr.msk.bf16.mxu1 %vm3791_vm2, %v3789_v23 }
 0x116   : >> { %v2021_v21 = vrot.slane %v2016_v31, %v3981_v30 }
 0x117   : >> { %v2023_v54 = vpack.i.b16 %v1916_v16, %v1916_v16  ;;  %v2344_v16 = vld [vmem:[#allocation2 + $0x58] sm:$0x1] }
 0x118   : >> { %vm2043_vm0 = vcmp.eq.bf16.partialorder %v2021_v21, %v3963_v22 }
 0x119   : >> { %v2059_v26 = vsel %vm2043_vm0, 65537, %v3792_v37  ;;  %v2028_v59 = vrot.slane %v2023_v54, %v3981_v30 }
 0x11a   : >> { %v3442_v1 = vcombine.low %v2059_v26, %v2059_v26  ;;  %v3443_v28 = vcombine.high %v2059_v26, %v2059_v26 }
 0x11b   : >> { %vm2044_vm3 = vcmp.eq.bf16.partialorder %v2028_v59, %v3963_v22  ;;  %v2345_v59 = vld [vmem:[#allocation2 + $0x60] sm:$0xff] }
 0x11c   : >> { %vm2153_vm7 = vcmp.ne.s16.totalorder %v3442_v1, 0  ;;  %vm2154_vm5 = vcmp.ne.s16.totalorder %v3443_v28, 0  ;;  %v2060_v63 = vsel %vm2044_vm3, 65537, %v3792_v37 }
 0x11d   : >> { %v2185_v19 = vsel %vm2153_vm7, 65537, %v3792_v37  ;;  %v2186_v25 = vsel %vm2154_vm5, 65537, %v3792_v37  ;;  %v3444_v23 = vcombine.low %v2060_v63, %v2060_v63  ;;  %v3445_v17 = vcombine.high %v2060_v63, %v2060_v63 }
 0x11e   : >> { %v2217_v2 = vunpack.c.l.b16 %v2185_v19  ;;  %v2218_v27 = vunpack.c.l.b16 %v2186_v25  ;;  %v2346_v19 = vld [vmem:[#allocation2 + $0x68] sm:$0x1] }
 0x11f   : >> { %vm2155_vm2 = vcmp.ne.s16.totalorder %v3444_v23, 0  ;;  %vm2156_vm8 = vcmp.ne.s16.totalorder %v3445_v17, 0 }
 0x120   : >> { %vm2249_vm10 = vcmp.ne.s32.totalorder %v2217_v2, 0  ;;  %vm2250_vm11 = vcmp.ne.s32.totalorder %v2218_v27, 0  ;;  %v2187_v30 = vsel %vm2155_vm2, 65537, %v3792_v37  ;;  %v2188_v13 = vsel %vm2156_vm8, 65537, %v3792_v37  ;;  %v2347_v2 = vld [vmem:[#allocation2 + $0x70] sm:$0xff] }
 0x121   : >> { %vm3506_vm12 = vmpackc.low %vm2250_vm11, %vm2249_vm10  ;;  %v2219_v36 = vunpack.c.l.b16 %v2187_v30  ;;  %v2220_v42 = vunpack.c.l.b16 %v2188_v13 }
 0x122   : >> { %3637 = vmatmul.mubr.msk.bf16.vlgmr.msra.gmra.mxu0 %vm3506_vm12, %v3793_v47 }
 0x123   : >> { %vm2251_vm13 = vcmp.ne.s32.totalorder %v2219_v36, 0  ;;  %vm2252_vm14 = vcmp.ne.s32.totalorder %v2220_v42, 0  ;;  %v2348_v36 = vld [vmem:[#allocation2 + $0x78] sm:$0x1] }
 0x124   : >> { %vm3508_vm1 = vmpackc.low %vm2252_vm14, %vm2251_vm13 }
 0x125   : >> { %3643 = vmatmul.mubr.msk.bf16.vlgmr.msra.gmra.mxu1 %vm3508_vm1, %v3793_v47 }
 0x14d   : >> { %v2399_v12 = vpop.f32.mrf.mxu0 }
 0x14e   : >> { %v3021_v35 = vadd.f32 %v2399_v12, %v2333_v34 }
 0x14f   : >> { %v3554_v6 = vpop.f32.mrf.mxu0 }
 0x150   : >> { %3054 = vst.msk [vmem:[#allocation2] sm:$0xff] %vm3053_vm4, %v3021_v35  ;;  %v2349_v35 = vld [vmem:[#allocation2 + $0x80] sm:$0xff] }
 0x151   : >> { %v2402_v20 = vpop.f32.mrf.mxu0 }
 0x152   : >> { %v3022_v37 = vadd.f32 %v2402_v20, %v2334_v11 }
 0x153   : >> { %v3555_v41 = vpop.f32.mrf.mxu0 }
 0x154   : >> { %3056 = vst.msk [vmem:[#allocation2 + $0x8] sm:$0x1] %vm3055_vm9, %v3022_v37  ;;  %v2350_v37 = vld [vmem:[#allocation2 + $0x88] sm:$0x1] }
 0x157   : >> { %v2440_v51 = vpop.f32.mrf.mxu1 }
 0x158   : >> { %v3023_v38 = vadd.f32 %v2440_v51, %v2335_v29  ;;  %v2351_v29 = vld [vmem:[#allocation2 + $0x90] sm:$0xff] }
 0x159   : >> { %v3560_v60 = vpop.f32.mrf.mxu1 }
 0x15a   : >> { %3057 = vst.msk [vmem:[#allocation2 + $0x10] sm:$0xff] %vm3053_vm4, %v3023_v38 }
 0x15b   : >> { %v2443_v47 = vpop.f32.mrf.mxu1 }
 0x15c   : >> { %v3024_v39 = vadd.f32 %v2443_v47, %v2336_v40 }
 0x15d   : >> { %v3561_v15 = vpop.f32.mrf.mxu1 }
 0x15e   : >> { %3058 = vst.msk [vmem:[#allocation2 + $0x18] sm:$0x1] %vm3055_vm9, %v3024_v39  ;;  %v2352_v39 = vld [vmem:[#allocation2 + $0x98] sm:$0x1] }
 0x161   : >> { %v2481_v53 = vpop.f32.mrf.mxu0 }
 0x162   : >> { %v3025_v57 = vadd.f32 %v2481_v53, %v2337_v61 }
 0x163   : >> { %v3566_v44 = vpop.f32.mrf.mxu0 }
 0x164   : >> { %3059 = vst.msk [vmem:[#allocation2 + $0x20] sm:$0xff] %vm3053_vm4, %v3025_v57  ;;  %v2353_v57 = vld [vmem:[#allocation2 + $0xa0] sm:$0xff] }
 0x165   : >> { %v2484_v46 = vpop.f32.mrf.mxu0 }
 0x166   : >> { %v3026_v9 = vadd.f32 %v2484_v46, %v2338_v7 }
 0x167   : >> { %v3567_v0 = vpop.f32.mrf.mxu0 }
 0x168   : >> { %3060 = vst.msk [vmem:[#allocation2 + $0x28] sm:$0x1] %vm3055_vm9, %v3026_v9  ;;  %v2354_v9 = vld [vmem:[#allocation2 + $0xa8] sm:$0x1]  ;;  %v2355_v0 = vld [vmem:[#allocation2 + $0xb0] sm:$0xff] }
 0x16c   : >> { %v2522_v8 = vpop.f32.mrf.mxu1 }
 0x16d   : >> { %v3027_v33 = vadd.f32 %v2522_v8, %v2339_v43 }
 0x16e   : >> { %v3572_v49 = vpop.f32.mrf.mxu1 }
 0x16f   : >> { %3061 = vst.msk [vmem:[#allocation2 + $0x30] sm:$0xff] %vm3053_vm4, %v3027_v33 }
 0x170   : >> { %v2525_v24 = vpop.f32.mrf.mxu1 }
 0x171   : >> { %v3028_v50 = vadd.f32 %v2525_v24, %v2340_v3 }
 0x172   : >> { %v3573_v48 = vpop.f32.mrf.mxu1 }
 0x173   : >> { %3062 = vst.msk [vmem:[#allocation2 + $0x38] sm:$0x1] %vm3055_vm9, %v3028_v50  ;;  %v2356_v50 = vld [vmem:[#allocation2 + $0xb8] sm:$0x1] }
 0x174   : >> { %v2563_v56 = vpop.f32.mrf.mxu0 }
 0x175   : >> { %v3029_v4 = vadd.f32 %v2563_v56, %v2341_v62 }
 0x176   : >> { %v3578_v58 = vpop.f32.mrf.mxu0 }
 0x177   : >> { %3063 = vst.msk [vmem:[#allocation2 + $0x40] sm:$0xff] %vm3053_vm4, %v3029_v4  ;;  %v2357_v4 = vld [vmem:[#allocation2 + $0xc0] sm:$0xff] }
 0x178   : >> { %v2566_v14 = vpop.f32.mrf.mxu0 }
 0x179   : >> { %v3030_v45 = vadd.f32 %v2566_v14, %v2342_v52 }
 0x17a   : >> { %v3579_v55 = vpop.f32.mrf.mxu0 }
 0x17b   : >> { %3064 = vst.msk [vmem:[#allocation2 + $0x48] sm:$0x1] %vm3055_vm9, %v3030_v45  ;;  %v2358_v45 = vld [vmem:[#allocation2 + $0xc8] sm:$0x1] }
 0x180   : >> { %v2604_v32 = vpop.f32.mrf.mxu1 }
 0x181   : >> { %v3031_v5 = vadd.f32 %v2604_v32, %v2343_v10  ;;  %v2359_v32 = vld [vmem:[#allocation2 + $0xd0] sm:$0xff] }
 0x182   : >> { %v3584_v31 = vpop.f32.mrf.mxu1 }
 0x183   : >> { %3065 = vst.msk [vmem:[#allocation2 + $0x50] sm:$0xff] %vm3053_vm4, %v3031_v5 }
 0x184   : >> { %v2607_v21 = vpop.f32.mrf.mxu1 }
 0x185   : >> { %v3032_v54 = vadd.f32 %v2607_v21, %v2344_v16 }
 0x186   : >> { %v3585_v26 = vpop.f32.mrf.mxu1 }
 0x187   : >> { %3066 = vst.msk [vmem:[#allocation2 + $0x58] sm:$0x1] %vm3055_vm9, %v3032_v54  ;;  %v2360_v54 = vld [vmem:[#allocation2 + $0xd8] sm:$0x1] }
 0x188   : >> { %v2645_v1 = vpop.f32.mrf.mxu0 }
 0x189   : >> { %v3033_v28 = vadd.f32 %v2645_v1, %v2345_v59 }
 0x18a   : >> { %v3590_v63 = vpop.f32.mrf.mxu0 }
 0x18b   : >> { %3067 = vst.msk [vmem:[#allocation2 + $0x60] sm:$0xff] %vm3053_vm4, %v3033_v28  ;;  %v2361_v28 = vld [vmem:[#allocation2 + $0xe0] sm:$0xff] }
 0x18c   : >> { %v2648_v25 = vpop.f32.mrf.mxu0 }
 0x18d   : >> { %v3034_v23 = vadd.f32 %v2648_v25, %v2346_v19  ;;  %v2363_v25 = vld [vmem:[#allocation2 + $0xf0] sm:$0xff] }
 0x18e   : >> { %v3591_v17 = vpop.f32.mrf.mxu0 }
 0x18f   : >> { %3068 = vst.msk [vmem:[#allocation2 + $0x68] sm:$0x1] %vm3055_vm9, %v3034_v23  ;;  %v2362_v17 = vld [vmem:[#allocation2 + $0xe8] sm:$0x1] }
 0x195   : >> { %v2686_v27 = vpop.f32.mrf.mxu1 }
 0x196   : >> { %v3035_v30 = vadd.f32 %v2686_v27, %v2347_v2 }
 0x197   : >> { %v3596_v13 = vpop.f32.mrf.mxu1 }
 0x198   : >> { %3069 = vst.msk [vmem:[#allocation2 + $0x70] sm:$0xff] %vm3053_vm4, %v3035_v30 }
 0x199   : >> { %v2689_v42 = vpop.f32.mrf.mxu1 }
 0x19a   : >> { %v3036_v34 = vadd.f32 %v2689_v42, %v2348_v36  ;;  %v2364_v42 = vld [vmem:[#allocation2 + $0xf8] sm:$0x1] }
 0x19b   : >> { %v3597_v12 = vpop.f32.mrf.mxu1 }
 0x19c   : >> { %3070 = vst.msk [vmem:[#allocation2 + $0x78] sm:$0x1] %vm3055_vm9, %v3036_v34 }
 0x1a4   : >> { %v2727_v6 = vpop.f32.mrf.mxu0 }
 0x1a5   : >> { %v3037_v11 = vadd.f32 %v2727_v6, %v2349_v35 }
 0x1a6   : >> { %v3602_v20 = vpop.f32.mrf.mxu0 }
 0x1a7   : >> { %3071 = vst.msk [vmem:[#allocation2 + $0x80] sm:$0xff] %vm3053_vm4, %v3037_v11 }
 0x1a8   : >> { %v2730_v41 = vpop.f32.mrf.mxu0 }
 0x1a9   : >> { %v3038_v51 = vadd.f32 %v2730_v41, %v2350_v37 }
 0x1aa   : >> { %v3603_v38 = vpop.f32.mrf.mxu0 }
 0x1ab   : >> { %v2768_v60 = vpop.f32.mrf.mxu1  ;;  %3072 = vst.msk [vmem:[#allocation2 + $0x88] sm:$0x1] %vm3055_vm9, %v3038_v51 }
 0x1ac   : >> { %v3039_v40 = vadd.f32 %v2768_v60, %v2351_v29 }
 0x1ad   : >> { %v3608_v47 = vpop.f32.mrf.mxu1 }
 0x1ae   : >> { %3073 = vst.msk [vmem:[#allocation2 + $0x90] sm:$0xff] %vm3053_vm4, %v3039_v40 }
 0x1af   : >> { %v2771_v15 = vpop.f32.mrf.mxu1 }
 0x1b0   : >> { %v3040_v61 = vadd.f32 %v2771_v15, %v2352_v39 }
 0x1b1   : >> { %v3609_v53 = vpop.f32.mrf.mxu1 }
 0x1b2   : >> { %3074 = vst.msk [vmem:[#allocation2 + $0x98] sm:$0x1] %vm3055_vm9, %v3040_v61 }
 0x1ba   : >> { %v2809_v44 = vpop.f32.mrf.mxu0 }
 0x1bb   : >> { %v3041_v7 = vadd.f32 %v2809_v44, %v2353_v57 }
 0x1bc   : >> { %v3614_v46 = vpop.f32.mrf.mxu0 }
 0x1bd   : >> { %3075 = vst.msk [vmem:[#allocation2 + $0xa0] sm:$0xff] %vm3053_vm4, %v3041_v7 }
 0x1be   : >> { %v2812_v43 = vpop.f32.mrf.mxu0 }
 0x1bf   : >> { %v3042_v33 = vadd.f32 %v2812_v43, %v2354_v9 }
 0x1c0   : >> { %v2850_v8 = vpop.f32.mrf.mxu1  ;;  %v3615_v3 = vpop.f32.mrf.mxu0 }
 0x1c1   : >> { %v3043_v49 = vadd.f32 %v2850_v8, %v2355_v0  ;;  %3076 = vst.msk [vmem:[#allocation2 + $0xa8] sm:$0x1] %vm3055_vm9, %v3042_v33 }
 0x1c2   : >> { %v3620_v24 = vpop.f32.mrf.mxu1 }
 0x1c3   : >> { %3077 = vst.msk [vmem:[#allocation2 + $0xb0] sm:$0xff] %vm3053_vm4, %v3043_v49 }
 0x1c4   : >> { %v2853_v48 = vpop.f32.mrf.mxu1 }
 0x1c5   : >> { %v3044_v62 = vadd.f32 %v2853_v48, %v2356_v50 }
 0x1c6   : >> { %v3621_v56 = vpop.f32.mrf.mxu1 }
 0x1c7   : >> { %3078 = vst.msk [vmem:[#allocation2 + $0xb8] sm:$0x1] %vm3055_vm9, %v3044_v62 }
 0x1cd   : >> { %v2891_v58 = vpop.f32.mrf.mxu0 }
 0x1ce   : >> { %v3045_v52 = vadd.f32 %v2891_v58, %v2357_v4 }
 0x1cf   : >> { %v3626_v14 = vpop.f32.mrf.mxu0 }
 0x1d0   : >> { %3079 = vst.msk [vmem:[#allocation2 + $0xc0] sm:$0xff] %vm3053_vm4, %v3045_v52 }
 0x1d1   : >> { %v2894_v55 = vpop.f32.mrf.mxu0 }
 0x1d2   : >> { %v3046_v10 = vadd.f32 %v2894_v55, %v2358_v45 }
 0x1d3   : >> { %v3627_v5 = vpop.f32.mrf.mxu0 }
 0x1d4   : >> { %3080 = vst.msk [vmem:[#allocation2 + $0xc8] sm:$0x1] %vm3055_vm9, %v3046_v10  ;;  %v2932_v31 = vpop.f32.mrf.mxu1 }
 0x1d5   : >> { %v3047_v16 = vadd.f32 %v2932_v31, %v2359_v32 }
 0x1d6   : >> { %v3632_v21 = vpop.f32.mrf.mxu1 }
 0x1d7   : >> { %3081 = vst.msk [vmem:[#allocation2 + $0xd0] sm:$0xff] %vm3053_vm4, %v3047_v16 }
 0x1d8   : >> { %v2935_v26 = vpop.f32.mrf.mxu1 }
 0x1d9   : >> { %v3048_v59 = vadd.f32 %v2935_v26, %v2360_v54 }
 0x1da   : >> { %v3633_v1 = vpop.f32.mrf.mxu1 }
 0x1db   : >> { %3082 = vst.msk [vmem:[#allocation2 + $0xd8] sm:$0x1] %vm3055_vm9, %v3048_v59 }
 0x1e2   : >> { %v2973_v63 = vpop.f32.mrf.mxu0 }
 0x1e3   : >> { %v3049_v19 = vadd.f32 %v2973_v63, %v2361_v28 }
 0x1e4   : >> { %v3638_v23 = vpop.f32.mrf.mxu0 }
 0x1e5   : >> { %3083 = vst.msk [vmem:[#allocation2 + $0xe0] sm:$0xff] %vm3053_vm4, %v3049_v19  ;;  %v3014_v2 = vpop.f32.mrf.mxu1 }
 0x1e6   : >> { %v3051_v27 = vadd.f32 %v3014_v2, %v2363_v25  ;;  %v2976_v30 = vpop.f32.mrf.mxu0 }
 0x1e7   : >> { %v3050_v13 = vadd.f32 %v2976_v30, %v2362_v17  ;;  %v3644_v36 = vpop.f32.mrf.mxu1 }
 0x1e8   : >> { %3085 = vst.msk [vmem:[#allocation2 + $0xf0] sm:$0xff] %vm3053_vm4, %v3051_v27  ;;  %v3639_v34 = vpop.f32.mrf.mxu0  ;;  %498 = sbr.rel (!%p496_p12) target bundleno = 84 (0x54), region = 236 }
 0x1e9   : >> { %3084 = vst.msk [vmem:[#allocation2 + $0xe8] sm:$0x1] %vm3055_vm9, %v3050_v13  ;;  %v3017_v12 = vpop.f32.mrf.mxu1 }
 0x1ea   : >> { %v3052_v35 = vadd.f32 %v3017_v12, %v2364_v42 }
 0x1eb   : >> { %v3645_v6 = vpop.f32.mrf.mxu1 }
 0x1ec   : >> { %3086 = vst.msk [vmem:[#allocation2 + $0xf8] sm:$0x1] %vm3055_vm9, %v3052_v35 }
 0x1ed   : > { %3090 = sbr.rel (%p3510_p13) target bundleno = 517 (0x205), region = 173 }
 0x1f2   : > { %v3091_v11 = vld [vmem:[#allocation2] sm:$0xff]  ;;  %v3092_v20 = vld [vmem:[#allocation2 + $0x8] sm:$0x1]  ;;  %v3093_v37 = vld [vmem:[#allocation2 + $0x10] sm:$0xff] }
 0x1f3   : > { %3124 = vst.msk [vmem:[%s3916_s11] sm:$0xff] %vm3053_vm4, %v3091_v11  ;;  %3127 = vst.msk [vmem:[%s3916_s11 + $0x10] sm:$0xff] %vm3053_vm4, %v3093_v37  ;;  %v3094_v18 = vld [vmem:[#allocation2 + $0x18] sm:$0x1]  ;;  %v3095_v22 = vld [vmem:[#allocation2 + $0x20] sm:$0xff] }
 0x1f4   : > { %3126 = vst.msk [vmem:[%s3916_s11 + $0x8] sm:$0x1] %vm3055_vm9, %v3092_v20  ;;  %v3096_v41 = vld [vmem:[#allocation2 + $0x28] sm:$0x1]  ;;  %3128 = vst.msk [vmem:[%s3916_s11 + $0x18] sm:$0x1] %vm3055_vm9, %v3094_v18 }
 0x1f5   : > { %3129 = vst.msk [vmem:[%s3916_s11 + $0x20] sm:$0xff] %vm3053_vm4, %v3095_v22  ;;  %v3097_v29 = vld [vmem:[#allocation2 + $0x30] sm:$0xff]  ;;  %v3098_v51 = vld [vmem:[#allocation2 + $0x38] sm:$0x1]  ;;  %v3099_v38 = vld [vmem:[#allocation2 + $0x40] sm:$0xff] }
 0x1f6   : > { %3130 = vst.msk [vmem:[%s3916_s11 + $0x28] sm:$0x1] %vm3055_vm9, %v3096_v41  ;;  %3132 = vst.msk [vmem:[%s3916_s11 + $0x38] sm:$0x1] %vm3055_vm9, %v3098_v51  ;;  %v3100_v60 = vld [vmem:[#allocation2 + $0x48] sm:$0x1] }
 0x1f7   : > { %3131 = vst.msk [vmem:[%s3916_s11 + $0x30] sm:$0xff] %vm3053_vm4, %v3097_v29  ;;  %3133 = vst.msk [vmem:[%s3916_s11 + $0x40] sm:$0xff] %vm3053_vm4, %v3099_v38  ;;  %v3101_v40 = vld [vmem:[#allocation2 + $0x50] sm:$0xff]  ;;  %v3102_v47 = vld [vmem:[#allocation2 + $0x58] sm:$0x1] }
 0x1f8   : > { %3134 = vst.msk [vmem:[%s3916_s11 + $0x48] sm:$0x1] %vm3055_vm9, %v3100_v60  ;;  %3136 = vst.msk [vmem:[%s3916_s11 + $0x58] sm:$0x1] %vm3055_vm9, %v3102_v47  ;;  %v3103_v39 = vld [vmem:[#allocation2 + $0x60] sm:$0xff]  ;;  %v3105_v61 = vld [vmem:[#allocation2 + $0x70] sm:$0xff] }
 0x1f9   : > { %3135 = vst.msk [vmem:[%s3916_s11 + $0x50] sm:$0xff] %vm3053_vm4, %v3101_v40  ;;  %v3104_v15 = vld [vmem:[#allocation2 + $0x68] sm:$0x1]  ;;  %3137 = vst.msk [vmem:[%s3916_s11 + $0x60] sm:$0xff] %vm3053_vm4, %v3103_v39  ;;  %v3106_v53 = vld [vmem:[#allocation2 + $0x78] sm:$0x1] }
 0x1fa   : > { %3138 = vst.msk [vmem:[%s3916_s11 + $0x68] sm:$0x1] %vm3055_vm9, %v3104_v15  ;;  %v3107_v57 = vld [vmem:[#allocation2 + $0x80] sm:$0xff]  ;;  %v3108_v44 = vld [vmem:[#allocation2 + $0x88] sm:$0x1]  ;;  %v3109_v7 = vld [vmem:[#allocation2 + $0x90] sm:$0xff] }
 0x1fb   : > { %3139 = vst.msk [vmem:[%s3916_s11 + $0x70] sm:$0xff] %vm3053_vm4, %v3105_v61  ;;  %3141 = vst.msk [vmem:[%s3916_s11 + $0x80] sm:$0xff] %vm3053_vm4, %v3107_v57  ;;  %v3110_v46 = vld [vmem:[#allocation2 + $0x98] sm:$0x1]  ;;  %v3111_v9 = vld [vmem:[#allocation2 + $0xa0] sm:$0xff] }
 0x1fc   : > { %3140 = vst.msk [vmem:[%s3916_s11 + $0x78] sm:$0x1] %vm3055_vm9, %v3106_v53  ;;  %3142 = vst.msk [vmem:[%s3916_s11 + $0x88] sm:$0x1] %vm3055_vm9, %v3108_v44  ;;  %v3112_v0 = vld [vmem:[#allocation2 + $0xa8] sm:$0x1] }
 0x1fd   : > { %3143 = vst.msk [vmem:[%s3916_s11 + $0x90] sm:$0xff] %vm3053_vm4, %v3109_v7  ;;  %3145 = vst.msk [vmem:[%s3916_s11 + $0xa0] sm:$0xff] %vm3053_vm4, %v3111_v9  ;;  %v3113_v43 = vld [vmem:[#allocation2 + $0xb0] sm:$0xff]  ;;  %v3114_v8 = vld [vmem:[#allocation2 + $0xb8] sm:$0x1] }
 0x1fe   : > { %3144 = vst.msk [vmem:[%s3916_s11 + $0x98] sm:$0x1] %vm3055_vm9, %v3110_v46  ;;  %3146 = vst.msk [vmem:[%s3916_s11 + $0xa8] sm:$0x1] %vm3055_vm9, %v3112_v0  ;;  %v3115_v33 = vld [vmem:[#allocation2 + $0xc0] sm:$0xff]  ;;  %v3117_v3 = vld [vmem:[#allocation2 + $0xd0] sm:$0xff] }
 0x1ff   : > { %3147 = vst.msk [vmem:[%s3916_s11 + $0xb0] sm:$0xff] %vm3053_vm4, %v3113_v43  ;;  %v3116_v49 = vld [vmem:[#allocation2 + $0xc8] sm:$0x1]  ;;  %3149 = vst.msk [vmem:[%s3916_s11 + $0xc0] sm:$0xff] %vm3053_vm4, %v3115_v33  ;;  %v3118_v24 = vld [vmem:[#allocation2 + $0xd8] sm:$0x1] }
 0x200   : > { %3148 = vst.msk [vmem:[%s3916_s11 + $0xb8] sm:$0x1] %vm3055_vm9, %v3114_v8  ;;  %3150 = vst.msk [vmem:[%s3916_s11 + $0xc8] sm:$0x1] %vm3055_vm9, %v3116_v49  ;;  %v3119_v50 = vld [vmem:[#allocation2 + $0xe0] sm:$0xff]  ;;  %v3121_v62 = vld [vmem:[#allocation2 + $0xf0] sm:$0xff] }
 0x201   : > { %3151 = vst.msk [vmem:[%s3916_s11 + $0xd0] sm:$0xff] %vm3053_vm4, %v3117_v3  ;;  %v3120_v48 = vld [vmem:[#allocation2 + $0xe8] sm:$0x1]  ;;  %3153 = vst.msk [vmem:[%s3916_s11 + $0xe0] sm:$0xff] %vm3053_vm4, %v3119_v50  ;;  %v3122_v56 = vld [vmem:[#allocation2 + $0xf8] sm:$0x1] }
 0x202   : > { %3152 = vst.msk [vmem:[%s3916_s11 + $0xd8] sm:$0x1] %vm3055_vm9, %v3118_v24  ;;  %3154 = vst.msk [vmem:[%s3916_s11 + $0xe8] sm:$0x1] %vm3055_vm9, %v3120_v48 }
 0x203   : > { %3155 = vst.msk [vmem:[%s3916_s11 + $0xf0] sm:$0xff] %vm3053_vm4, %v3121_v62 }
 0x204   : > { %3156 = vst.msk [vmem:[%s3916_s11 + $0xf8] sm:$0x1] %vm3055_vm9, %v3122_v56 }
 0x205 PF: > { %s14_s21 = sadd.s32 1, %s3782_s21   ;;  %s4949_s15 = smov %s3762_s16 }
 0x206   : > { %p11_p0 = scmp.ge.s32.totalorder %s14_s21, 6   ;;  %s4950_s16 = smov %s3877_s5 }
 0x207   : > { %s4951_s17 = smov %s3774_s19  ;;  %s4952_s18 = smov %s3778_s20 }
 0x208   : > { %s4953_s19 = smov %s4956_s22  ;;  %s4954_s20 = smov %s4960_s23 }
 0x209   :  { %13 = sbr.rel (!%p11_p0) target bundleno = 4 (0x4), region = 247 }

</bundles_post_ra>
